<compile_context>
chip_gen: v7x
topology: tpu7x:2x2x1
jax: 0.10.0
libtpu: 0.0.40
codegen_flags: <defaults>
</compile_context>

<pallas_src>
from functools import partial

import numpy as np
import jax
import jax.numpy as jnp
from jax import lax
from jax.experimental import pallas as pl
from jax.experimental.pallas import tpu as pltpu


# --------------------------------------------------------------------------------------
# Fused kernel: one batch sample per grid step.
# Activation layouts (per sample):
#   conv1 out a1 : (28, 224)  lane = w*8  + c   (c = conv1 out channel)
#   pool1 out p1 : (16, 128)  lane = wp*8 + c   (wp = padded width index, zero border)
#   conv2 out a2 : (14, 224)  lane = w*16 + c
#   pool2 out p2 : (7, 112)   lane = w*16 + c
# --------------------------------------------------------------------------------------
def _cnn_fused_kernel(
    x_ref,            # (1, 28, 28*Cin)   input sample, lane = w*Cin + ci
    inj_ref,          # (30, 28)          row zero-pad injection for conv1
    b1m_ref,          # (3, 28*Cin, 224)  conv1 banded weights (one per kh)
    bias1_ref,        # (1, 224)
    r1e_ref, r1o_ref,  # (16, 28)         pool1 row selection (+ conv2 row padding)
    c1e_ref, c1o_ref,  # (224, 128)       pool1 col selection (+ conv2 col padding)
    b2m_ref,          # (3, 128, 224)     conv2 banded weights (one per kh)
    bias2_ref,        # (1, 224)
    r2e_ref, r2o_ref,  # (7, 14)          pool2 row selection
    c2e_ref, c2o_ref,  # (224, 112)       pool2 col selection
    wfc_ref,          # (7, 112, 128)     fc1 weight, permuted to (h, w*16+c, n_padded)
    bfc_ref,          # (1, 128)          fc1 bias, padded to 128 lanes
    o_ref,            # (1, 1, 128)       padded logits for this sample
):
    f32 = jnp.float32

    def dot(a, b):
        return jnp.dot(a, b, preferred_element_type=f32)

    H1 = x_ref.shape[1]            # 28
    H2 = r1e_ref.shape[0] - 2      # 14
    H3 = r2e_ref.shape[0]          # 7

    # ---- conv1 + bias + ReLU (MXU) -------------------------------------------------
    x = x_ref[0]                                     # (28, 28*Cin)
    xr = dot(inj_ref[...], x)                        # (30, 28*Cin): zero rows top/bottom
    acc1 = dot(xr[0:H1], b1m_ref[0])
    for kh in range(1, 3):
        acc1 = acc1 + dot(xr[kh:kh + H1], b1m_ref[kh])
    a1 = jnp.maximum(acc1 + bias1_ref[...], 0.0)     # (28, 224)

    # ---- maxpool1 (2x2) + zero-pad for conv2, via selection dots --------------------
    rmax1 = jnp.maximum(dot(r1e_ref[...], a1), dot(r1o_ref[...], a1))     # (16, 224)
    p1 = jnp.maximum(dot(rmax1, c1e_ref[...]), dot(rmax1, c1o_ref[...]))  # (16, 128)

    # ---- conv2 + bias + ReLU (MXU, K = 128) ------------------------------------------
    acc2 = dot(p1[0:H2], b2m_ref[0])
    for kh in range(1, 3):
        acc2 = acc2 + dot(p1[kh:kh + H2], b2m_ref[kh])
    a2 = jnp.maximum(acc2 + bias2_ref[...], 0.0)     # (14, 224)

    # ---- maxpool2 (2x2) ---------------------------------------------------------------
    rmax2 = jnp.maximum(dot(r2e_ref[...], a2), dot(r2o_ref[...], a2))     # (7, 224)
    p2 = jnp.maximum(dot(rmax2, c2e_ref[...]), dot(rmax2, c2o_ref[...]))  # (7, 112)

    # ---- fc1: contract both dims of (7, 112) against the permuted weight -------------
    acc = bfc_ref[...]                               # (1, 128)
    for h in range(H3):
        acc = acc + dot(p2[h:h + 1], wfc_ref[h])
    o_ref[0] = acc


# --------------------------------------------------------------------------------------
# One-time parameter preparation (structure matrices, permuted fc weight).
# --------------------------------------------------------------------------------------
def _pool_row_sel(n_out, pad):
    """Even/odd row-selection matrices of shape (n_out + 2*pad, 2*n_out)."""
    rows = n_out + 2 * pad
    e = np.zeros((rows, 2 * n_out), np.float32)
    o = np.zeros((rows, 2 * n_out), np.float32)
    for i in range(n_out):
        e[i + pad, 2 * i] = 1.0
        o[i + pad, 2 * i + 1] = 1.0
    return jnp.asarray(e), jnp.asarray(o)


def _pool_col_sel(n_out, c, pad):
    """Even/odd column (width) selection matrices of shape (2*n_out*c, (n_out+2*pad)*c)."""
    cols = (n_out + 2 * pad) * c
    e = np.zeros((2 * n_out * c, cols), np.float32)
    o = np.zeros((2 * n_out * c, cols), np.float32)
    idx = np.arange(c)
    for w in range(n_out):
        e[(2 * w) * c + idx, (w + pad) * c + idx] = 1.0
        o[(2 * w + 1) * c + idx, (w + pad) * c + idx] = 1.0
    return jnp.asarray(e), jnp.asarray(o)


def _banded_conv_mats(w_hwio, in_w, out_w, diag_offset):
    """(3, in_w*Cin, out_w*Cout): kw and Cin contraction folded into one matrix per kh."""
    mats = []
    for kh in range(3):
        m = 0.0
        for kw in range(3):
            eye = np.eye(in_w, out_w, k=diag_offset - kw).astype(np.float32)
            m = m + jnp.kron(jnp.asarray(eye), w_hwio[kh, kw])
        mats.append(m)
    return jnp.stack(mats)


def prepare_kernel_params(params):
    """One-time packing of torch-style params into kernel-ready MXU operands."""
    w1, b1 = params["conv1_w"], params["conv1_b"]     # (3,3,Cin,8), (8,)
    w2, b2 = params["conv2_w"], params["conv2_b"]     # (3,3,8,16), (16,)
    wf, bf = params["fc1_w"], params["fc1_b"]         # (16*7*7, n_cls) NCHW-flat, (n_cls,)
    n_cls = bf.shape[0]

    r1e, r1o = _pool_row_sel(14, pad=1)               # (16, 28)  (rows padded for conv2)
    c1e, c1o = _pool_col_sel(14, 8, pad=1)            # (224, 128)
    r2e, r2o = _pool_row_sel(7, pad=0)                # (7, 14)
    c2e, c2o = _pool_col_sel(7, 16, pad=0)            # (224, 112)

    # fc1 weight: NCHW-flat (c*49 + h*7 + w) -> (h, w*16+c, n), padded to 128 lanes.
    wfc = wf.reshape(16, 7, 7, n_cls).transpose(1, 2, 0, 3).reshape(7, 7 * 16, n_cls)
    wfc = jnp.pad(wfc, ((0, 0), (0, 0), (0, 128 - n_cls)))
    bfc = jnp.pad(bf, (0, 128 - n_cls))[None, :]

    return {
        "inj": jnp.asarray(np.eye(30, 28, k=-1), jnp.float32),   # conv1 row zero-pad
        "b1m": _banded_conv_mats(w1, 28, 28, diag_offset=1),     # (3, 28*Cin, 224)
        "bias1": jnp.tile(b1, 28)[None, :],                      # (1, 224)
        "r1e": r1e, "r1o": r1o, "c1e": c1e, "c1o": c1o,
        "b2m": _banded_conv_mats(w2, 16, 14, diag_offset=0),     # (3, 128, 224)
        "bias2": jnp.tile(b2, 14)[None, :],                      # (1, 224)
        "r2e": r2e, "r2o": r2o, "c2e": c2e, "c2o": c2o,
        "wfc": wfc, "bfc": bfc,
    }


# --------------------------------------------------------------------------------------
# Forward pass: one fused pallas_call, gridded over the batch.
# --------------------------------------------------------------------------------------
@partial(jax.jit, static_argnames=("num_classes",))
def cnn_forward(kp, x_nchw, *, num_classes=10):
    B, cin_x, H, W = x_nchw.shape
    cin = kp["b1m"].shape[1] // 28
    assert (H, W) == (28, 28) and cin_x == cin, "fc1 (16*7*7) implies 28x28 input"

    # NCHW -> lane-dense per-sample 2-D tiles: rows = h, lanes = w*Cin + ci.
    x2d = jnp.transpose(x_nchw.astype(jnp.float32), (0, 2, 3, 1)).reshape(B, 28, 28 * cin)

    def full(shape):
        zeros = (0,) * len(shape)
        return pl.BlockSpec(shape, lambda b, _z=zeros: _z)   # same block every step -> DMA'd once

    operands = (
        x2d, kp["inj"], kp["b1m"], kp["bias1"],
        kp["r1e"], kp["r1o"], kp["c1e"], kp["c1o"],
        kp["b2m"], kp["bias2"],
        kp["r2e"], kp["r2o"], kp["c2e"], kp["c2o"],
        kp["wfc"], kp["bfc"],
    )
    in_specs = [pl.BlockSpec((1, 28, 28 * cin), lambda b: (b, 0, 0))]
    in_specs += [full(op.shape) for op in operands[1:]]

    out = pl.pallas_call(
        _cnn_fused_kernel,
        out_shape=jax.ShapeDtypeStruct((B, 1, 128), jnp.float32),
        grid=(B,),
        in_specs=in_specs,
        out_specs=pl.BlockSpec((1, 1, 128), lambda b: (b, 0, 0)),
        compiler_params=pltpu.CompilerParams(
            dimension_semantics=("parallel",),   # megacore batch split on v7x
        ),
    )(*operands)

    return out.reshape(B, 128)[:, :num_classes]


# --------------------------------------------------------------------------------------
# Parameters + pure-JAX reference.
# --------------------------------------------------------------------------------------
def init_params(key, in_channels=1, num_classes=10):
    k1, k2, k3, k4, k5, k6 = jax.random.split(key, 6)
    return {
        "conv1_w": 0.1 * jax.random.normal(k1, (3, 3, in_channels, 8), jnp.float32),
        "conv1_b": 0.1 * jax.random.normal(k2, (8,), jnp.float32),
        "conv2_w": 0.1 * jax.random.normal(k3, (3, 3, 8, 16), jnp.float32),
        "conv2_b": 0.1 * jax.random.normal(k4, (16,), jnp.float32),
        # fc weight stored as (in, out) == torch fc1.weight.T, with the in-index in
        # torch's NCHW flatten order (c*49 + h*7 + w).
        "fc1_w": 0.05 * jax.random.normal(k5, (16 * 7 * 7, num_classes), jnp.float32),
        "fc1_b": 0.05 * jax.random.normal(k6, (num_classes,), jnp.float32),
    }


def cnn_reference(params, x_nchw):
    x = jnp.transpose(x_nchw, (0, 2, 3, 1)).astype(jnp.float32)

    def conv(x, w, b):
        y = lax.conv_general_dilated(
            x, w, window_strides=(1, 1), padding=((1, 1), (1, 1)),
            dimension_numbers=("NHWC", "HWIO", "NHWC"),
            precision=lax.Precision.HIGHEST)
        return jax.nn.relu(y + b)

    def pool(x):
        return lax.reduce_window(x, -jnp.inf, lax.max,
                                 (1, 2, 2, 1), (1, 2, 2, 1), "VALID")

    x = pool(conv(x, params["conv1_w"], params["conv1_b"]))
    x = pool(conv(x, params["conv2_w"], params["conv2_b"]))
    x = jnp.transpose(x, (0, 3, 1, 2)).reshape(x.shape[0], -1)   # NCHW flatten (torch order)
    return jnp.dot(x, params["fc1_w"], precision=lax.Precision.HIGHEST) + params["fc1_b"]


if __name__ == "__main__":
    key = jax.random.PRNGKey(0)
    pkey, xkey = jax.random.split(key)
    params = init_params(pkey)
    kparams = prepare_kernel_params(params)

    # fc1 expects 16*7*7 features -> 28x28 (MNIST-like) input, NCHW like torch.
    x = jax.random.normal(xkey, (2, 1, 28, 28), jnp.float32)

    out = jax.block_until_ready(cnn_forward(kparams, x))
    ref = cnn_reference(params, x)

    assert out.shape == (2, 10)
    # Tolerance leaves headroom for possible bf16-pass MXU rounding inside the kernel
    # (worst-case ~3e-3 at these activation scales); typically the match is ~1e-6.
    err = float(jnp.max(jnp.abs(out - ref)))
    assert jnp.allclose(out, ref, atol=5e-3, rtol=5e-3), err
    print("KERNEL_OK")
</pallas_src>

<mosaic_0001>
module attributes {stable_mosaic.version = 11 : i64} {
  func.func @_cnn_fused_kernel(%arg0: i32, %arg1: memref<1x28x28xf32, #tpu.memory_space<vmem>>, %arg2: memref<30x28xf32, #tpu.memory_space<vmem>>, %arg3: memref<3x28x224xf32, #tpu.memory_space<vmem>>, %arg4: memref<1x224xf32, #tpu.memory_space<vmem>>, %arg5: memref<16x28xf32, #tpu.memory_space<vmem>>, %arg6: memref<16x28xf32, #tpu.memory_space<vmem>>, %arg7: memref<224x128xf32, #tpu.memory_space<vmem>>, %arg8: memref<224x128xf32, #tpu.memory_space<vmem>>, %arg9: memref<3x128x224xf32, #tpu.memory_space<vmem>>, %arg10: memref<1x224xf32, #tpu.memory_space<vmem>>, %arg11: memref<7x14xf32, #tpu.memory_space<vmem>>, %arg12: memref<7x14xf32, #tpu.memory_space<vmem>>, %arg13: memref<224x112xf32, #tpu.memory_space<vmem>>, %arg14: memref<224x112xf32, #tpu.memory_space<vmem>>, %arg15: memref<7x112x128xf32, #tpu.memory_space<vmem>>, %arg16: memref<1x128xf32, #tpu.memory_space<vmem>>, %arg17: memref<1x1x128xf32, #tpu.memory_space<vmem>>) attributes {dimension_semantics = [#tpu.dimension_semantics<parallel>], iteration_bounds = array<i64: 2>, scalar_prefetch = 0 : i64, scratch_operands = 0 : i64, tpu.core_type = #tpu.core_type<tc>, window_params = [{transform_indices = @transform_0, window_bounds = array<i64: 1, 28, 28>}, {pipeline_mode = #tpu.pipeline_mode<synchronous>, transform_indices = @transform_1, window_bounds = array<i64: 30, 28>}, {pipeline_mode = #tpu.pipeline_mode<synchronous>, transform_indices = @transform_2, window_bounds = array<i64: 3, 28, 224>}, {pipeline_mode = #tpu.pipeline_mode<synchronous>, transform_indices = @transform_3, window_bounds = array<i64: 1, 224>}, {pipeline_mode = #tpu.pipeline_mode<synchronous>, transform_indices = @transform_4, window_bounds = array<i64: 16, 28>}, {pipeline_mode = #tpu.pipeline_mode<synchronous>, transform_indices = @transform_5, window_bounds = array<i64: 16, 28>}, {pipeline_mode = #tpu.pipeline_mode<synchronous>, transform_indices = @transform_6, window_bounds = array<i64: 224, 128>}, {pipeline_mode = #tpu.pipeline_mode<synchronous>, transform_indices = @transform_7, window_bounds = array<i64: 224, 128>}, {pipeline_mode = #tpu.pipeline_mode<synchronous>, transform_indices = @transform_8, window_bounds = array<i64: 3, 128, 224>}, {pipeline_mode = #tpu.pipeline_mode<synchronous>, transform_indices = @transform_9, window_bounds = array<i64: 1, 224>}, {pipeline_mode = #tpu.pipeline_mode<synchronous>, transform_indices = @transform_10, window_bounds = array<i64: 7, 14>}, {pipeline_mode = #tpu.pipeline_mode<synchronous>, transform_indices = @transform_11, window_bounds = array<i64: 7, 14>}, {pipeline_mode = #tpu.pipeline_mode<synchronous>, transform_indices = @transform_12, window_bounds = array<i64: 224, 112>}, {pipeline_mode = #tpu.pipeline_mode<synchronous>, transform_indices = @transform_13, window_bounds = array<i64: 224, 112>}, {pipeline_mode = #tpu.pipeline_mode<synchronous>, transform_indices = @transform_14, window_bounds = array<i64: 7, 112, 128>}, {pipeline_mode = #tpu.pipeline_mode<synchronous>, transform_indices = @transform_15, window_bounds = array<i64: 1, 128>}, {transform_indices = @transform_16, window_bounds = array<i64: 1, 1, 128>}]} {
    %c0 = arith.constant 0 : index
    %c0_0 = arith.constant 0 : index
    %c0_1 = arith.constant 0 : index
    %0 = vector.load %arg1[%c0, %c0_0, %c0_1] : memref<1x28x28xf32, #tpu.memory_space<vmem>>, vector<1x28x28xf32>
    %1 = vector.shape_cast %0 : vector<1x28x28xf32> to vector<28x28xf32>
    %c0_2 = arith.constant 0 : index
    %c0_3 = arith.constant 0 : index
    %2 = vector.load %arg2[%c0_2, %c0_3] : memref<30x28xf32, #tpu.memory_space<vmem>>, vector<30x28xf32>
    %cst = arith.constant dense<0.000000e+00> : vector<30x28xf32>
    %3 = tpu.matmul %2, %1, %cst {dimension_numbers = #tpu.dot_dimension_numbers<[1], [0], [0], [1], [0, 0, 1, 1], [], []>} : vector<30x28xf32>, vector<28x28xf32>, vector<30x28xf32> -> vector<30x28xf32>
    %4 = vector.extract_strided_slice %3 {offsets = [0, 0], sizes = [28, 28], strides = [1, 1]} : vector<30x28xf32> to vector<28x28xf32>
    %c0_4 = arith.constant 0 : index
    %c0_5 = arith.constant 0 : index
    %c0_6 = arith.constant 0 : index
    %5 = vector.load %arg3[%c0_4, %c0_5, %c0_6] : memref<3x28x224xf32, #tpu.memory_space<vmem>>, vector<1x28x224xf32>
    %6 = vector.shape_cast %5 : vector<1x28x224xf32> to vector<28x224xf32>
    %cst_7 = arith.constant dense<0.000000e+00> : vector<28x224xf32>
    %7 = tpu.matmul %4, %6, %cst_7 {dimension_numbers = #tpu.dot_dimension_numbers<[1], [0], [0], [1], [0, 0, 1, 1], [], []>} : vector<28x28xf32>, vector<28x224xf32>, vector<28x224xf32> -> vector<28x224xf32>
    %8 = vector.extract_strided_slice %3 {offsets = [1, 0], sizes = [28, 28], strides = [1, 1]} : vector<30x28xf32> to vector<28x28xf32>
    %c1 = arith.constant 1 : index
    %c0_8 = arith.constant 0 : index
    %c0_9 = arith.constant 0 : index
    %9 = vector.load %arg3[%c1, %c0_8, %c0_9] : memref<3x28x224xf32, #tpu.memory_space<vmem>>, vector<1x28x224xf32>
    %10 = vector.shape_cast %9 : vector<1x28x224xf32> to vector<28x224xf32>
    %cst_10 = arith.constant dense<0.000000e+00> : vector<28x224xf32>
    %11 = tpu.matmul %8, %10, %cst_10 {dimension_numbers = #tpu.dot_dimension_numbers<[1], [0], [0], [1], [0, 0, 1, 1], [], []>} : vector<28x28xf32>, vector<28x224xf32>, vector<28x224xf32> -> vector<28x224xf32>
    %12 = arith.addf %7, %11 : vector<28x224xf32>
    %13 = vector.extract_strided_slice %3 {offsets = [2, 0], sizes = [28, 28], strides = [1, 1]} : vector<30x28xf32> to vector<28x28xf32>
    %c2 = arith.constant 2 : index
    %c0_11 = arith.constant 0 : index
    %c0_12 = arith.constant 0 : index
    %14 = vector.load %arg3[%c2, %c0_11, %c0_12] : memref<3x28x224xf32, #tpu.memory_space<vmem>>, vector<1x28x224xf32>
    %15 = vector.shape_cast %14 : vector<1x28x224xf32> to vector<28x224xf32>
    %cst_13 = arith.constant dense<0.000000e+00> : vector<28x224xf32>
    %16 = tpu.matmul %13, %15, %cst_13 {dimension_numbers = #tpu.dot_dimension_numbers<[1], [0], [0], [1], [0, 0, 1, 1], [], []>} : vector<28x28xf32>, vector<28x224xf32>, vector<28x224xf32> -> vector<28x224xf32>
    %17 = arith.addf %12, %16 : vector<28x224xf32>
    %c0_14 = arith.constant 0 : index
    %c0_15 = arith.constant 0 : index
    %18 = vector.load %arg4[%c0_14, %c0_15] : memref<1x224xf32, #tpu.memory_space<vmem>>, vector<1x224xf32>
    %19 = vector.broadcast %18 : vector<1x224xf32> to vector<28x224xf32>
    %20 = arith.addf %17, %19 : vector<28x224xf32>
    %cst_16 = arith.constant 0.000000e+00 : f32
    %21 = vector.broadcast %cst_16 : f32 to vector<28x224xf32>
    %22 = arith.maximumf %20, %21 : vector<28x224xf32>
    %c0_17 = arith.constant 0 : index
    %c0_18 = arith.constant 0 : index
    %23 = vector.load %arg5[%c0_17, %c0_18] : memref<16x28xf32, #tpu.memory_space<vmem>>, vector<16x28xf32>
    %cst_19 = arith.constant dense<0.000000e+00> : vector<16x224xf32>
    %24 = tpu.matmul %23, %22, %cst_19 {dimension_numbers = #tpu.dot_dimension_numbers<[1], [0], [0], [1], [0, 0, 1, 1], [], []>} : vector<16x28xf32>, vector<28x224xf32>, vector<16x224xf32> -> vector<16x224xf32>
    %c0_20 = arith.constant 0 : index
    %c0_21 = arith.constant 0 : index
    %25 = vector.load %arg6[%c0_20, %c0_21] : memref<16x28xf32, #tpu.memory_space<vmem>>, vector<16x28xf32>
    %cst_22 = arith.constant dense<0.000000e+00> : vector<16x224xf32>
    %26 = tpu.matmul %25, %22, %cst_22 {dimension_numbers = #tpu.dot_dimension_numbers<[1], [0], [0], [1], [0, 0, 1, 1], [], []>} : vector<16x28xf32>, vector<28x224xf32>, vector<16x224xf32> -> vector<16x224xf32>
    %27 = arith.maximumf %24, %26 : vector<16x224xf32>
    %c0_23 = arith.constant 0 : index
    %c0_24 = arith.constant 0 : index
    %28 = vector.load %arg7[%c0_23, %c0_24] : memref<224x128xf32, #tpu.memory_space<vmem>>, vector<224x128xf32>
    %cst_25 = arith.constant dense<0.000000e+00> : vector<16x128xf32>
    %29 = tpu.matmul %27, %28, %cst_25 {dimension_numbers = #tpu.dot_dimension_numbers<[1], [0], [0], [1], [0, 0, 1, 1], [], []>} : vector<16x224xf32>, vector<224x128xf32>, vector<16x128xf32> -> vector<16x128xf32>
    %c0_26 = arith.constant 0 : index
    %c0_27 = arith.constant 0 : index
    %30 = vector.load %arg8[%c0_26, %c0_27] : memref<224x128xf32, #tpu.memory_space<vmem>>, vector<224x128xf32>
    %cst_28 = arith.constant dense<0.000000e+00> : vector<16x128xf32>
    %31 = tpu.matmul %27, %30, %cst_28 {dimension_numbers = #tpu.dot_dimension_numbers<[1], [0], [0], [1], [0, 0, 1, 1], [], []>} : vector<16x224xf32>, vector<224x128xf32>, vector<16x128xf32> -> vector<16x128xf32>
    %32 = arith.maximumf %29, %31 : vector<16x128xf32>
    %33 = vector.extract_strided_slice %32 {offsets = [0, 0], sizes = [14, 128], strides = [1, 1]} : vector<16x128xf32> to vector<14x128xf32>
    %c0_29 = arith.constant 0 : index
    %c0_30 = arith.constant 0 : index
    %c0_31 = arith.constant 0 : index
    %34 = vector.load %arg9[%c0_29, %c0_30, %c0_31] : memref<3x128x224xf32, #tpu.memory_space<vmem>>, vector<1x128x224xf32>
    %35 = vector.shape_cast %34 : vector<1x128x224xf32> to vector<128x224xf32>
    %cst_32 = arith.constant dense<0.000000e+00> : vector<14x224xf32>
    %36 = tpu.matmul %33, %35, %cst_32 {dimension_numbers = #tpu.dot_dimension_numbers<[1], [0], [0], [1], [0, 0, 1, 1], [], []>} : vector<14x128xf32>, vector<128x224xf32>, vector<14x224xf32> -> vector<14x224xf32>
    %37 = vector.extract_strided_slice %32 {offsets = [1, 0], sizes = [14, 128], strides = [1, 1]} : vector<16x128xf32> to vector<14x128xf32>
    %c1_33 = arith.constant 1 : index
    %c0_34 = arith.constant 0 : index
    %c0_35 = arith.constant 0 : index
    %38 = vector.load %arg9[%c1_33, %c0_34, %c0_35] : memref<3x128x224xf32, #tpu.memory_space<vmem>>, vector<1x128x224xf32>
    %39 = vector.shape_cast %38 : vector<1x128x224xf32> to vector<128x224xf32>
    %cst_36 = arith.constant dense<0.000000e+00> : vector<14x224xf32>
    %40 = tpu.matmul %37, %39, %cst_36 {dimension_numbers = #tpu.dot_dimension_numbers<[1], [0], [0], [1], [0, 0, 1, 1], [], []>} : vector<14x128xf32>, vector<128x224xf32>, vector<14x224xf32> -> vector<14x224xf32>
    %41 = arith.addf %36, %40 : vector<14x224xf32>
    %42 = vector.extract_strided_slice %32 {offsets = [2, 0], sizes = [14, 128], strides = [1, 1]} : vector<16x128xf32> to vector<14x128xf32>
    %c2_37 = arith.constant 2 : index
    %c0_38 = arith.constant 0 : index
    %c0_39 = arith.constant 0 : index
    %43 = vector.load %arg9[%c2_37, %c0_38, %c0_39] : memref<3x128x224xf32, #tpu.memory_space<vmem>>, vector<1x128x224xf32>
    %44 = vector.shape_cast %43 : vector<1x128x224xf32> to vector<128x224xf32>
    %cst_40 = arith.constant dense<0.000000e+00> : vector<14x224xf32>
    %45 = tpu.matmul %42, %44, %cst_40 {dimension_numbers = #tpu.dot_dimension_numbers<[1], [0], [0], [1], [0, 0, 1, 1], [], []>} : vector<14x128xf32>, vector<128x224xf32>, vector<14x224xf32> -> vector<14x224xf32>
    %46 = arith.addf %41, %45 : vector<14x224xf32>
    %c0_41 = arith.constant 0 : index
    %c0_42 = arith.constant 0 : index
    %47 = vector.load %arg10[%c0_41, %c0_42] : memref<1x224xf32, #tpu.memory_space<vmem>>, vector<1x224xf32>
    %48 = vector.broadcast %47 : vector<1x224xf32> to vector<14x224xf32>
    %49 = arith.addf %46, %48 : vector<14x224xf32>
    %cst_43 = arith.constant 0.000000e+00 : f32
    %50 = vector.broadcast %cst_43 : f32 to vector<14x224xf32>
    %51 = arith.maximumf %49, %50 : vector<14x224xf32>
    %c0_44 = arith.constant 0 : index
    %c0_45 = arith.constant 0 : index
    %52 = vector.load %arg11[%c0_44, %c0_45] : memref<7x14xf32, #tpu.memory_space<vmem>>, vector<7x14xf32>
    %cst_46 = arith.constant dense<0.000000e+00> : vector<7x224xf32>
    %53 = tpu.matmul %52, %51, %cst_46 {dimension_numbers = #tpu.dot_dimension_numbers<[1], [0], [0], [1], [0, 0, 1, 1], [], []>} : vector<7x14xf32>, vector<14x224xf32>, vector<7x224xf32> -> vector<7x224xf32>
    %c0_47 = arith.constant 0 : index
    %c0_48 = arith.constant 0 : index
    %54 = vector.load %arg12[%c0_47, %c0_48] : memref<7x14xf32, #tpu.memory_space<vmem>>, vector<7x14xf32>
    %cst_49 = arith.constant dense<0.000000e+00> : vector<7x224xf32>
    %55 = tpu.matmul %54, %51, %cst_49 {dimension_numbers = #tpu.dot_dimension_numbers<[1], [0], [0], [1], [0, 0, 1, 1], [], []>} : vector<7x14xf32>, vector<14x224xf32>, vector<7x224xf32> -> vector<7x224xf32>
    %56 = arith.maximumf %53, %55 : vector<7x224xf32>
    %c0_50 = arith.constant 0 : index
    %c0_51 = arith.constant 0 : index
    %57 = vector.load %arg13[%c0_50, %c0_51] : memref<224x112xf32, #tpu.memory_space<vmem>>, vector<224x112xf32>
    %cst_52 = arith.constant dense<0.000000e+00> : vector<7x112xf32>
    %58 = tpu.matmul %56, %57, %cst_52 {dimension_numbers = #tpu.dot_dimension_numbers<[1], [0], [0], [1], [0, 0, 1, 1], [], []>} : vector<7x224xf32>, vector<224x112xf32>, vector<7x112xf32> -> vector<7x112xf32>
    %c0_53 = arith.constant 0 : index
    %c0_54 = arith.constant 0 : index
    %59 = vector.load %arg14[%c0_53, %c0_54] : memref<224x112xf32, #tpu.memory_space<vmem>>, vector<224x112xf32>
    %cst_55 = arith.constant dense<0.000000e+00> : vector<7x112xf32>
    %60 = tpu.matmul %56, %59, %cst_55 {dimension_numbers = #tpu.dot_dimension_numbers<[1], [0], [0], [1], [0, 0, 1, 1], [], []>} : vector<7x224xf32>, vector<224x112xf32>, vector<7x112xf32> -> vector<7x112xf32>
    %61 = arith.maximumf %58, %60 : vector<7x112xf32>
    %c0_56 = arith.constant 0 : index
    %c0_57 = arith.constant 0 : index
    %62 = vector.load %arg16[%c0_56, %c0_57] : memref<1x128xf32, #tpu.memory_space<vmem>>, vector<1x128xf32>
    %63 = vector.extract_strided_slice %61 {offsets = [0, 0], sizes = [1, 112], strides = [1, 1]} : vector<7x112xf32> to vector<1x112xf32>
    %c0_58 = arith.constant 0 : index
    %c0_59 = arith.constant 0 : index
    %c0_60 = arith.constant 0 : index
    %64 = vector.load %arg15[%c0_58, %c0_59, %c0_60] : memref<7x112x128xf32, #tpu.memory_space<vmem>>, vector<1x112x128xf32>
    %65 = vector.shape_cast %64 : vector<1x112x128xf32> to vector<112x128xf32>
    %cst_61 = arith.constant dense<0.000000e+00> : vector<1x128xf32>
    %66 = tpu.matmul %63, %65, %cst_61 {dimension_numbers = #tpu.dot_dimension_numbers<[1], [0], [0], [1], [0, 0, 1, 1], [], []>} : vector<1x112xf32>, vector<112x128xf32>, vector<1x128xf32> -> vector<1x128xf32>
    %67 = arith.addf %62, %66 : vector<1x128xf32>
    %68 = vector.extract_strided_slice %61 {offsets = [1, 0], sizes = [1, 112], strides = [1, 1]} : vector<7x112xf32> to vector<1x112xf32>
    %c1_62 = arith.constant 1 : index
    %c0_63 = arith.constant 0 : index
    %c0_64 = arith.constant 0 : index
    %69 = vector.load %arg15[%c1_62, %c0_63, %c0_64] : memref<7x112x128xf32, #tpu.memory_space<vmem>>, vector<1x112x128xf32>
    %70 = vector.shape_cast %69 : vector<1x112x128xf32> to vector<112x128xf32>
    %cst_65 = arith.constant dense<0.000000e+00> : vector<1x128xf32>
    %71 = tpu.matmul %68, %70, %cst_65 {dimension_numbers = #tpu.dot_dimension_numbers<[1], [0], [0], [1], [0, 0, 1, 1], [], []>} : vector<1x112xf32>, vector<112x128xf32>, vector<1x128xf32> -> vector<1x128xf32>
    %72 = arith.addf %67, %71 : vector<1x128xf32>
    %73 = vector.extract_strided_slice %61 {offsets = [2, 0], sizes = [1, 112], strides = [1, 1]} : vector<7x112xf32> to vector<1x112xf32>
    %c2_66 = arith.constant 2 : index
    %c0_67 = arith.constant 0 : index
    %c0_68 = arith.constant 0 : index
    %74 = vector.load %arg15[%c2_66, %c0_67, %c0_68] : memref<7x112x128xf32, #tpu.memory_space<vmem>>, vector<1x112x128xf32>
    %75 = vector.shape_cast %74 : vector<1x112x128xf32> to vector<112x128xf32>
    %cst_69 = arith.constant dense<0.000000e+00> : vector<1x128xf32>
    %76 = tpu.matmul %73, %75, %cst_69 {dimension_numbers = #tpu.dot_dimension_numbers<[1], [0], [0], [1], [0, 0, 1, 1], [], []>} : vector<1x112xf32>, vector<112x128xf32>, vector<1x128xf32> -> vector<1x128xf32>
    %77 = arith.addf %72, %76 : vector<1x128xf32>
    %78 = vector.extract_strided_slice %61 {offsets = [3, 0], sizes = [1, 112], strides = [1, 1]} : vector<7x112xf32> to vector<1x112xf32>
    %c3 = arith.constant 3 : index
    %c0_70 = arith.constant 0 : index
    %c0_71 = arith.constant 0 : index
    %79 = vector.load %arg15[%c3, %c0_70, %c0_71] : memref<7x112x128xf32, #tpu.memory_space<vmem>>, vector<1x112x128xf32>
    %80 = vector.shape_cast %79 : vector<1x112x128xf32> to vector<112x128xf32>
    %cst_72 = arith.constant dense<0.000000e+00> : vector<1x128xf32>
    %81 = tpu.matmul %78, %80, %cst_72 {dimension_numbers = #tpu.dot_dimension_numbers<[1], [0], [0], [1], [0, 0, 1, 1], [], []>} : vector<1x112xf32>, vector<112x128xf32>, vector<1x128xf32> -> vector<1x128xf32>
    %82 = arith.addf %77, %81 : vector<1x128xf32>
    %83 = vector.extract_strided_slice %61 {offsets = [4, 0], sizes = [1, 112], strides = [1, 1]} : vector<7x112xf32> to vector<1x112xf32>
    %c4 = arith.constant 4 : index
    %c0_73 = arith.constant 0 : index
    %c0_74 = arith.constant 0 : index
    %84 = vector.load %arg15[%c4, %c0_73, %c0_74] : memref<7x112x128xf32, #tpu.memory_space<vmem>>, vector<1x112x128xf32>
    %85 = vector.shape_cast %84 : vector<1x112x128xf32> to vector<112x128xf32>
    %cst_75 = arith.constant dense<0.000000e+00> : vector<1x128xf32>
    %86 = tpu.matmul %83, %85, %cst_75 {dimension_numbers = #tpu.dot_dimension_numbers<[1], [0], [0], [1], [0, 0, 1, 1], [], []>} : vector<1x112xf32>, vector<112x128xf32>, vector<1x128xf32> -> vector<1x128xf32>
    %87 = arith.addf %82, %86 : vector<1x128xf32>
    %88 = vector.extract_strided_slice %61 {offsets = [5, 0], sizes = [1, 112], strides = [1, 1]} : vector<7x112xf32> to vector<1x112xf32>
    %c5 = arith.constant 5 : index
    %c0_76 = arith.constant 0 : index
    %c0_77 = arith.constant 0 : index
    %89 = vector.load %arg15[%c5, %c0_76, %c0_77] : memref<7x112x128xf32, #tpu.memory_space<vmem>>, vector<1x112x128xf32>
    %90 = vector.shape_cast %89 : vector<1x112x128xf32> to vector<112x128xf32>
    %cst_78 = arith.constant dense<0.000000e+00> : vector<1x128xf32>
    %91 = tpu.matmul %88, %90, %cst_78 {dimension_numbers = #tpu.dot_dimension_numbers<[1], [0], [0], [1], [0, 0, 1, 1], [], []>} : vector<1x112xf32>, vector<112x128xf32>, vector<1x128xf32> -> vector<1x128xf32>
    %92 = arith.addf %87, %91 : vector<1x128xf32>
    %93 = vector.extract_strided_slice %61 {offsets = [6, 0], sizes = [1, 112], strides = [1, 1]} : vector<7x112xf32> to vector<1x112xf32>
    %c6 = arith.constant 6 : index
    %c0_79 = arith.constant 0 : index
    %c0_80 = arith.constant 0 : index
    %94 = vector.load %arg15[%c6, %c0_79, %c0_80] : memref<7x112x128xf32, #tpu.memory_space<vmem>>, vector<1x112x128xf32>
    %95 = vector.shape_cast %94 : vector<1x112x128xf32> to vector<112x128xf32>
    %cst_81 = arith.constant dense<0.000000e+00> : vector<1x128xf32>
    %96 = tpu.matmul %93, %95, %cst_81 {dimension_numbers = #tpu.dot_dimension_numbers<[1], [0], [0], [1], [0, 0, 1, 1], [], []>} : vector<1x112xf32>, vector<112x128xf32>, vector<1x128xf32> -> vector<1x128xf32>
    %97 = arith.addf %92, %96 : vector<1x128xf32>
    %c0_82 = arith.constant 0 : index
    %c0_83 = arith.constant 0 : index
    %c0_84 = arith.constant 0 : index
    %98 = vector.load %arg17[%c0_82, %c0_83, %c0_84] : memref<1x1x128xf32, #tpu.memory_space<vmem>>, vector<1x1x128xf32>
    %99 = vector.shape_cast %98 : vector<1x1x128xf32> to vector<1x128xf32>
    %100 = vector.shape_cast %97 : vector<1x128xf32> to vector<1x1x128xf32>
    tpu.vector_store %arg17[%c0_82, %c0_83, %c0_84], %100 {strides = array<i32>} : memref<1x1x128xf32, #tpu.memory_space<vmem>>, vector<1x1x128xf32>,
    return
  }
  func.func @transform_0(%arg0: i32) -> (i32, i32, i32) {
    %c0_i32 = arith.constant 0 : i32
    %c0_i32_0 = arith.constant 0 : i32
    %c0_i32_1 = arith.constant 0 : i32
    return %arg0, %c0_i32, %c0_i32_0 : i32, i32, i32
  }
  func.func @transform_1(%arg0: i32) -> (i32, i32) {
    %c0_i32 = arith.constant 0 : i32
    %c0_i32_0 = arith.constant 0 : i32
    %c0_i32_1 = arith.constant 0 : i32
    return %c0_i32, %c0_i32_0 : i32, i32
  }
  func.func @transform_2(%arg0: i32) -> (i32, i32, i32) {
    %c0_i32 = arith.constant 0 : i32
    %c0_i32_0 = arith.constant 0 : i32
    %c0_i32_1 = arith.constant 0 : i32
    %c0_i32_2 = arith.constant 0 : i32
    return %c0_i32, %c0_i32_0, %c0_i32_1 : i32, i32, i32
  }
  func.func @transform_3(%arg0: i32) -> (i32, i32) {
    %c0_i32 = arith.constant 0 : i32
    %c0_i32_0 = arith.constant 0 : i32
    %c0_i32_1 = arith.constant 0 : i32
    return %c0_i32, %c0_i32_0 : i32, i32
  }
  func.func @transform_4(%arg0: i32) -> (i32, i32) {
    %c0_i32 = arith.constant 0 : i32
    %c0_i32_0 = arith.constant 0 : i32
    %c0_i32_1 = arith.constant 0 : i32
    return %c0_i32, %c0_i32_0 : i32, i32
  }
  func.func @transform_5(%arg0: i32) -> (i32, i32) {
    %c0_i32 = arith.constant 0 : i32
    %c0_i32_0 = arith.constant 0 : i32
    %c0_i32_1 = arith.constant 0 : i32
    return %c0_i32, %c0_i32_0 : i32, i32
  }
  func.func @transform_6(%arg0: i32) -> (i32, i32) {
    %c0_i32 = arith.constant 0 : i32
    %c0_i32_0 = arith.constant 0 : i32
    %c0_i32_1 = arith.constant 0 : i32
    return %c0_i32, %c0_i32_0 : i32, i32
  }
  func.func @transform_7(%arg0: i32) -> (i32, i32) {
    %c0_i32 = arith.constant 0 : i32
    %c0_i32_0 = arith.constant 0 : i32
    %c0_i32_1 = arith.constant 0 : i32
    return %c0_i32, %c0_i32_0 : i32, i32
  }
  func.func @transform_8(%arg0: i32) -> (i32, i32, i32) {
    %c0_i32 = arith.constant 0 : i32
    %c0_i32_0 = arith.constant 0 : i32
    %c0_i32_1 = arith.constant 0 : i32
    %c0_i32_2 = arith.constant 0 : i32
    return %c0_i32, %c0_i32_0, %c0_i32_1 : i32, i32, i32
  }
  func.func @transform_9(%arg0: i32) -> (i32, i32) {
    %c0_i32 = arith.constant 0 : i32
    %c0_i32_0 = arith.constant 0 : i32
    %c0_i32_1 = arith.constant 0 : i32
    return %c0_i32, %c0_i32_0 : i32, i32
  }
  func.func @transform_10(%arg0: i32) -> (i32, i32) {
    %c0_i32 = arith.constant 0 : i32
    %c0_i32_0 = arith.constant 0 : i32
    %c0_i32_1 = arith.constant 0 : i32
    return %c0_i32, %c0_i32_0 : i32, i32
  }
  func.func @transform_11(%arg0: i32) -> (i32, i32) {
    %c0_i32 = arith.constant 0 : i32
    %c0_i32_0 = arith.constant 0 : i32
    %c0_i32_1 = arith.constant 0 : i32
    return %c0_i32, %c0_i32_0 : i32, i32
  }
  func.func @transform_12(%arg0: i32) -> (i32, i32) {
    %c0_i32 = arith.constant 0 : i32
    %c0_i32_0 = arith.constant 0 : i32
    %c0_i32_1 = arith.constant 0 : i32
    return %c0_i32, %c0_i32_0 : i32, i32
  }
  func.func @transform_13(%arg0: i32) -> (i32, i32) {
    %c0_i32 = arith.constant 0 : i32
    %c0_i32_0 = arith.constant 0 : i32
    %c0_i32_1 = arith.constant 0 : i32
    return %c0_i32, %c0_i32_0 : i32, i32
  }
  func.func @transform_14(%arg0: i32) -> (i32, i32, i32) {
    %c0_i32 = arith.constant 0 : i32
    %c0_i32_0 = arith.constant 0 : i32
    %c0_i32_1 = arith.constant 0 : i32
    %c0_i32_2 = arith.constant 0 : i32
    return %c0_i32, %c0_i32_0, %c0_i32_1 : i32, i32, i32
  }
  func.func @transform_15(%arg0: i32) -> (i32, i32) {
    %c0_i32 = arith.constant 0 : i32
    %c0_i32_0 = arith.constant 0 : i32
    %c0_i32_1 = arith.constant 0 : i32
    return %c0_i32, %c0_i32_0 : i32, i32
  }
  func.func @transform_16(%arg0: i32) -> (i32, i32, i32) {
    %c0_i32 = arith.constant 0 : i32
    %c0_i32_0 = arith.constant 0 : i32
    %c0_i32_1 = arith.constant 0 : i32
    return %arg0, %c0_i32, %c0_i32_0 : i32, i32, i32
  }
}

</mosaic_0001>

<bundles_post_ra>
// kernel: cnn_forward.1
= control target key start
LH: loop header
LB: loop body
LE: loop exit
PB: predicated region body
PF: predicated region fallthrough
CT: control target
= control target key end

     0   :  { %s5982_s0 = inlined_call_operand.vmem [shape: f32[2,28,28], index: 0, kind: input, shape index: {}]   ;;  %s5983_s1 = inlined_call_operand.hbm [shape: f32[30,28], index: 1, kind: input, shape index: {}]   ;;  %s5984_s2 = inlined_call_operand.hbm [shape: f32[3,28,224], index: 2, kind: input, shape index: {}]   ;;  %s5985_s3 = inlined_call_operand.vmem [shape: f32[1,224], index: 3, kind: input, shape index: {}]   ;;  %s5986_s4 = inlined_call_operand.vmem [shape: f32[16,28], index: 4, kind: input, shape index: {}]   ;;  %s5987_s5 = inlined_call_operand.hbm [shape: f32[16,28], index: 5, kind: input, shape index: {}]   ;;  %s5988_s6 = inlined_call_operand.vmem [shape: f32[224,128], index: 6, kind: input, shape index: {}]   ;;  %s5989_s7 = inlined_call_operand.vmem [shape: f32[224,128], index: 7, kind: input, shape index: {}]   ;;  %s5990_s8 = inlined_call_operand.vmem [shape: f32[3,128,224], index: 8, kind: input, shape index: {}]   ;;  %s5991_s9 = inlined_call_operand.hbm [shape: f32[1,224], index: 9, kind: input, shape index: {}]   ;;  %s5992_s10 = inlined_call_operand.vmem [shape: f32[7,14], index: 10, kind: input, shape index: {}]   ;;  %s5993_s11 = inlined_call_operand.hbm [shape: f32[7,14], index: 11, kind: input, shape index: {}]   ;;  %s5994_s12 = inlined_call_operand.vmem [shape: f32[224,112], index: 12, kind: input, shape index: {}]   ;;  %s5995_s13 = inlined_call_operand.vmem [shape: f32[224,112], index: 13, kind: input, shape index: {}]   ;;  %s5996_s14 = inlined_call_operand.vmem [shape: f32[7,112,128], index: 14, kind: input, shape index: {}]   ;;  %s5997_s15 = inlined_call_operand.hbm [shape: f32[1,128], index: 15, kind: input, shape index: {}]   ;;  %s5998_s16 = inlined_call_operand.hbm [shape: f32[2,1,128], index: 16, kind: output, shape index: {}]  }
   0x1   :  { %6014 = sst [smem:[#allocation27_spill]] %s5982_s0 }
   0x2   :  { %6015 = sst [smem:[#allocation28_spill]] %s5984_s2 }
   0x3   :  { %6016 = sst [smem:[#allocation29_spill]] %s5991_s9 }
   0x4   :  { %6017 = sst [smem:[#allocation30_spill]] %s5995_s13 }
   0x5   :  { %6018 = sst [smem:[#allocation31_spill]] %s5996_s14 }
   0x6   :  { %6019 = sst [smem:[#allocation32_spill]] %s5998_s16 }
   0x7   :  { %21 = vsyncpa [#allocation3], 0 }
   0x8   :  { %22 = vsyncpa [#allocation6], 0 }
   0x9   :  { %23 = vsyncpa [#allocation9], 0 }
   0xa   :  { %24 = vsyncpa [#allocation12], 0 }
   0xb   :  { %25 = vsyncpa [#allocation4], 0 }
   0xc   :  { %27 = vsyncpa [#allocation4 + $0x1], 0  ;;  %s4517_s21 = smov 0   ;;  %s4519_s22 = smov 0  }
   0xd   :  { %s4521_s23 = smov 0   ;;  %s4523_s24 = smov 0  }
   0xe LB: > { %6020 = sst [smem:[#allocation19_spill]] %s4403_s21  ;;  %s4538_s25 = sadd.s32 4294967295, %s4415_s24   ;;  %s4415_s24 = sphi %s4523_s24, %s6058_s24   ;;  %s4411_s23 = sphi %s4521_s23, %s6061_s23   ;;  %s4407_s22 = sphi %s4519_s22, %s6060_s22   ;;  %s4403_s21 = sphi %s4517_s21, %s6059_s21  }
   0xf   : > { %6021 = sst [smem:[#allocation20_spill]] %s4407_s22  ;;  %s2974_s26 = sadd.s32 4294967294, %s4415_s24  }
  0x10   : > { %6022 = sst [smem:[#allocation21_spill]] %s4411_s23  ;;  %s4542_s27 = sadd.s32 1, %s4415_s24  }
  0x11   : > { %6023 = sst [smem:[#allocation22_spill]] %s4415_s24  ;;  %s381_s28 = sadd.s32 1, %s4411_s23 }
  0x12   : > { %6024 = sst [smem:[#allocation23_spill]] %s4542_s27  ;;  %s378_s29 = ssub.s32 %s4415_s24, %s4542_s27 }
  0x13   : > { %p391_p0 = scmp.ne.s32.totalorder %s4411_s23, %s4407_s22  ;;  %p379_p1 = scmp.eq.s32.totalorder %s378_s29, 0 }
  0x14   : > { %p392_p2 = scmp.eq.s32.totalorder %s4538_s25, 1  ;;  %p397_p3 = scmp.ne.s32.totalorder %s4407_s22, %s4403_s21 }
  0x15   : > { %p398_p4 = scmp.eq.s32.totalorder %s2974_s26, 1  ;;  %p2975_p7 = scmp.ge.s32.totalorder %s4415_s24, 1 }
  0x16   : > { %s4553_s30 = scalar_select %p379_p1, %s4411_s23, %s381_s28  }
  0x17   : > { %p4555_p5 = por %p392_p2, %p391_p0  ;;  %p4559_p6 = por %p398_p4, %p397_p3 }
  0x18   : > { %6025 = sst [smem:[#allocation24_spill]] %s4553_s30  ;;  %p405_p8 = scmp.lt.s32.totalorder %s4415_s24, 3 }
  0x19   : > { %s6026_s0 = scalar_select %p4555_p5, 1, 0 }
  0x1a   : > { %s6028_s17 = scalar_select %p4559_p6, 1, 0 }
  0x1b   : > { %6027 = sst [smem:[#allocation25_spill]] %s6026_s0  ;;  %p6006_p9 = scmp.eq.s32.totalorder %s4538_s25, 0 }
  0x1c   : > { %6029 = sst [smem:[#allocation26_spill]] %s6028_s17  ;;  %p4566_p10 = pnand %p2975_p7, %p405_p8 }
  0x1d   : > { %s4417_s19 = smov [#allocation5]   ;;  %s4418_s28 = smov [#allocation8]  }
  0x1e   : > { %s6030_s18 = scalar_select %p4566_p10, 1, 0 }
  0x1f   : > { %s430_s20 = sshll.u32 %s4417_s19, 4  ;;  %p4087_p11 = pneg %p4566_p10  ;;  %s4572_s20 = int_to_ptr.vmem [resolvable:$true] %s430_s20 }
  0x20   : > { %s472_s29 = sshll.u32 %s4418_s28, 4  ;;  %s4419_s30 = smov [#allocation2]   ;;  %s4580_s29 = int_to_ptr.vmem [resolvable:$true] %s472_s29 }
  0x21   : > { %p4576_p12 = pnand %p6006_p9, %p4087_p11  ;;  %s4582_s23 = sshll.u32 %s4419_s30, 4  ;;  %s418_s23 = int_to_ptr.vmem [resolvable:$true] %s4582_s23 }
  0x22   : > { %s6032_s2 = sld [smem:[#allocation28_spill]] }
  0x23   : > { %p4592_p0 = pneg %p4576_p12 }
  0x28   : > { %s4169_s19 = scalar_lea.hbm %s6032_s2, 3072 }
  0x29   : > { %p4170_p13 = scmp.ne.s32.totalorder %s6032_s2, %s4169_s19  ;;  %p4176_p3 = scmp.lt.u32.totalorder %s4169_s19, %s6032_s2 }
  0x2b   : > { %p4172_p1 = pnand %p4592_p0, %p4170_p13 }
  0x2d   : > { %p4173_p2 = pneg %p4172_p1 }
  0x2f   : > { %p4178_p4 = pnand %p4176_p3, %p4173_p2 }
  0x31   : > { %4181 = shalt.err (!%p4178_p4)
}
  0x32   : > { %s4182_s21 = scalar_lea.vmem %s4572_s20, 3072  ;;  %p4190_p9 = scmp.lt.s32.totalorder %s4572_s20, %s4572_s20 }
  0x33   : > { %p4183_p7 = scmp.ne.s32.totalorder %s4572_s20, %s4182_s21  ;;  %p4191_p6 = scmp.lt.s32.totalorder %s4182_s21, %s4182_s21 }
  0x35   : > { %p4185_p8 = pnand %p4183_p7, %p4592_p0  ;;  %p4192_p13 = por %p4191_p6, %p4190_p9 }
  0x37   : > { %p4186_p11 = pneg %p4185_p8 }
  0x39   : > { %p4193_p1 = pnand %p4192_p13, %p4186_p11 }
  0x3b   : > { %4196 = shalt.err (!%p4193_p1)
}
  0x3c   : > { %s4420_s24 = smov 256   ;;  %s4421_s27 = smov 16  }
  0x3d   : > { %4093 = dma.hbm_to_vmem [thread:$0]  (!%p4576_p12), %s6032_s2, 3072, %s4572_s20, [#allocation6], %s4420_s24, %s4420_s24, %s4421_s27  }
  0x3e   : > { %s6034_s9 = sld [smem:[#allocation29_spill]] }
  0x44   : > { %s4197_s0 = scalar_lea.hbm %s6034_s9, 32 }
  0x45   : > { %p4198_p6 = scmp.ne.s32.totalorder %s6034_s9, %s4197_s0  ;;  %p4204_p3 = scmp.lt.u32.totalorder %s4197_s0, %s6034_s9 }
  0x47   : > { %p4200_p9 = pnand %p4198_p6, %p4592_p0 }
  0x49   : > { %p4201_p2 = pneg %p4200_p9 }
  0x4b   : > { %p4206_p4 = pnand %p4204_p3, %p4201_p2 }
  0x4d   : > { %4209 = shalt.err (!%p4206_p4)
}
  0x4e   : > { %s4210_s20 = scalar_lea.vmem %s4580_s29, 32  ;;  %p4218_p13 = scmp.lt.s32.totalorder %s4580_s29, %s4580_s29 }
  0x4f   : > { %p4211_p7 = scmp.ne.s32.totalorder %s4580_s29, %s4210_s20  ;;  %p4219_p1 = scmp.lt.s32.totalorder %s4210_s20, %s4210_s20 }
  0x51   : > { %p4213_p8 = pnand %p4211_p7, %p4592_p0  ;;  %p4220_p6 = por %p4219_p1, %p4218_p13 }
  0x53   : > { %p4214_p11 = pneg %p4213_p8 }
  0x55   : > { %p4221_p9 = pnand %p4220_p6, %p4214_p11 }
  0x57   : > { %4224 = shalt.err (!%p4221_p9)
}
  0x58   : > { %4099 = dma.hbm_to_vmem [thread:$0]  (!%p4576_p12), %s6034_s9, 32, %s4580_s29, [#allocation9]  }
  0x59   : > { %s4225_s24 = scalar_lea.hbm %s5983_s1, 512 }
  0x5a   : > { %p4226_p2 = scmp.ne.s32.totalorder %s5983_s1, %s4225_s24  ;;  %p4232_p7 = scmp.lt.u32.totalorder %s4225_s24, %s5983_s1 }
  0x5c   : > { %p4228_p3 = pnand %p4226_p2, %p4592_p0 }
  0x5e   : > { %p4229_p4 = pneg %p4228_p3 }
  0x60   : > { %p4234_p8 = pnand %p4232_p7, %p4229_p4 }
  0x62   : > { %4237 = shalt.err (!%p4234_p8)
}
  0x63   : > { %s4238_s30 = scalar_lea.vmem %s418_s23, 512  ;;  %p4246_p6 = scmp.lt.s32.totalorder %s418_s23, %s418_s23 }
  0x64   : > { %p4239_p11 = scmp.ne.s32.totalorder %s418_s23, %s4238_s30  ;;  %p4247_p9 = scmp.lt.s32.totalorder %s4238_s30, %s4238_s30 }
  0x66   : > { %p4241_p13 = pnand %p4239_p11, %p4592_p0  ;;  %p4248_p5 = por %p4247_p9, %p4246_p6 }
  0x68   : > { %p4242_p1 = pneg %p4241_p13 }
  0x6a   : > { %p4249_p10 = pnand %p4248_p5, %p4242_p1 }
  0x6c   : > { %4252 = shalt.err (!%p4249_p10)
}
  0x6d   : > { %s4422_s29 = smov 128   ;;  %s4423_s21 = smov 8  }
  0x6e   : > { %4090 = dma.hbm_to_vmem [thread:$0]  (!%p4576_p12), %s5983_s1, 512, %s418_s23, [#allocation3], %s4422_s29, %s4422_s29, %s4423_s21  }
  0x6f   : > { %s4424_s14 = smov [#allocation7]   ;;  %s4425_s0 = smov [#allocation10]  }
  0x70   : > { %s449_s22 = sshll.u32 %s4424_s14, 4  ;;  %s486_s24 = sshll.u32 %s4425_s0, 4  ;;  %s450_s22 = int_to_ptr.vmem [resolvable:$true] %s449_s22  ;;  %s487_s24 = int_to_ptr.vmem [resolvable:$true] %s486_s24 }
  0x71   : > { %s4253_s19 = scalar_lea.hbm %s5987_s5, 256 }
  0x72   : > { %p4254_p5 = scmp.ne.s32.totalorder %s5987_s5, %s4253_s19  ;;  %p4260_p3 = scmp.lt.u32.totalorder %s4253_s19, %s5987_s5 }
  0x74   : > { %p4256_p10 = pnand %p4254_p5, %p4592_p0 }
  0x76   : > { %p4257_p2 = pneg %p4256_p10 }
  0x78   : > { %p4262_p4 = pnand %p4260_p3, %p4257_p2 }
  0x7a   : > { %4265 = shalt.err (!%p4262_p4)
}
  0x7b   : > { %s4266_s23 = scalar_lea.vmem %s450_s22, 256  ;;  %p4274_p13 = scmp.lt.s32.totalorder %s450_s22, %s450_s22 }
  0x7c   : > { %p4267_p7 = scmp.ne.s32.totalorder %s450_s22, %s4266_s23  ;;  %p4275_p1 = scmp.lt.s32.totalorder %s4266_s23, %s4266_s23 }
  0x7e   : > { %p4269_p8 = pnand %p4267_p7, %p4592_p0  ;;  %p4276_p6 = por %p4275_p1, %p4274_p13 }
  0x80   : > { %p4270_p11 = pneg %p4269_p8 }
  0x82   : > { %p4277_p9 = pnand %p4276_p6, %p4270_p11 }
  0x84   : > { %4280 = shalt.err (!%p4277_p9)
}
  0x85   : > { %4096 = dma.hbm_to_vmem [thread:$0]  (!%p4576_p12), %s5987_s5, 256, %s450_s22, [#allocation6], %s4422_s29, %s4422_s29, %s4423_s21  }
  0x86   : > { %s4281_s14 = scalar_lea.hbm %s5993_s11, 128 }
  0x87   : > { %p4282_p5 = scmp.ne.s32.totalorder %s5993_s11, %s4281_s14  ;;  %p4288_p3 = scmp.lt.u32.totalorder %s4281_s14, %s5993_s11 }
  0x89   : > { %p4284_p10 = pnand %p4282_p5, %p4592_p0 }
  0x8b   : > { %p4285_p2 = pneg %p4284_p10 }
  0x8d   : > { %p4290_p4 = pnand %p4288_p3, %p4285_p2 }
  0x8f   : > { %4293 = shalt.err (!%p4290_p4)
}
  0x90   : > { %s4294_s28 = scalar_lea.vmem %s487_s24, 128  ;;  %p4302_p13 = scmp.lt.s32.totalorder %s487_s24, %s487_s24 }
  0x91   : > { %p4295_p7 = scmp.ne.s32.totalorder %s487_s24, %s4294_s28  ;;  %p4303_p1 = scmp.lt.s32.totalorder %s4294_s28, %s4294_s28 }
  0x93   : > { %p4297_p8 = pnand %p4295_p7, %p4592_p0  ;;  %p4304_p6 = por %p4303_p1, %p4302_p13 }
  0x95   : > { %p4298_p11 = pneg %p4297_p8 }
  0x97   : > { %p4305_p9 = pnand %p4304_p6, %p4298_p11 }
  0x99   : > { %4308 = shalt.err (!%p4305_p9)
}
  0x9a   : > { %4102 = dma.hbm_to_vmem [thread:$0]  (!%p4576_p12), %s5993_s11, 128, %s487_s24, [#allocation9]  }
  0x9b   : > { %s4426_s22 = smov [#allocation11]   ;;  %s4309_s13 = scalar_lea.hbm %s5997_s15, 16 }
  0x9c   : > { %s506_s30 = sshll.u32 %s4426_s22, 4  ;;  %p4310_p5 = scmp.ne.s32.totalorder %s5997_s15, %s4309_s13  ;;  %s507_s30 = int_to_ptr.vmem [resolvable:$true] %s506_s30 }
  0x9d   : > { %p4316_p3 = scmp.lt.u32.totalorder %s4309_s13, %s5997_s15 }
  0x9e   : > { %p4312_p10 = pnand %p4310_p5, %p4592_p0 }
  0xa0   : > { %p4313_p2 = pneg %p4312_p10 }
  0xa2   : > { %p4318_p4 = pnand %p4316_p3, %p4313_p2 }
  0xa4   : > { %4321 = shalt.err (!%p4318_p4)
}
  0xa5   : > { %s4322_s24 = scalar_lea.vmem %s507_s30, 16  ;;  %s4329_s27 = scalar_lea.vmem %s507_s30, 32 }
  0xa6   : > { %p4323_p7 = scmp.ne.s32.totalorder %s507_s30, %s4322_s24  ;;  %p4330_p13 = scmp.lt.s32.totalorder %s507_s30, %s507_s30 }
  0xa7   : > { %p4331_p1 = scmp.lt.s32.totalorder %s4329_s27, %s4322_s24 }
  0xa8   : > { %p4325_p8 = pnand %p4323_p7, %p4592_p0 }
  0xa9   : > { %p4332_p6 = por %p4331_p1, %p4330_p13 }
  0xaa   : > { %p4326_p11 = pneg %p4325_p8 }
  0xac   : > { %p4333_p9 = pnand %p4332_p6, %p4326_p11 }
  0xae   : > { %4336 = shalt.err (!%p4333_p9)
}
  0xaf   : > { %4105 = dma.hbm_to_vmem [thread:$0]  (!%p4576_p12), %s5997_s15, 16, %s507_s30, [#allocation12]  }
  0xb0   : > { %p6035_p5 = scmp.ne.s32.totalorder %s6030_s18, 0 }
  0xb1   : > { %p6036_p10 = scmp.eq.s32.totalorder (!%p6035_p5), %s4538_s25, 0 }
  0xb2   : > { %527 = sbr.rel (%p6035_p5) target bundleno = 2345 (0x929), region = 84 }
  0xb9   : > { %4382 = dma.done.wait (%p6036_p10), [#allocation3], 512   ;;  %p6037_p0 = pmov %p6036_p10 }
  0xbb   : > { %4384 = vsyncadd (%p6037_p0), [#allocation3], 4294966784  ;;  %p6038_p2 = pmov %p6037_p0 }
  0xbc   : > { %p6039_p3 = pmov %p6037_p0 }
  0xbd   : > { %4386 = dma.done.wait (%p6038_p2), [#allocation6], 3328  }
  0xbe   : > { %4388 = vsyncadd (%p6039_p3), [#allocation6], 4294963968  ;;  %p6040_p4 = pmov %p6037_p0 }
  0xbf   : > { %p6041_p12 = pmov %p6037_p0 }
  0xc0   : > { %4390 = dma.done.wait (%p6040_p4), [#allocation9], 160  }
  0xc1   : > { %4392 = vsyncadd (%p6041_p12), [#allocation9], 4294967136  ;;  %p6042_p7 = pmov %p6037_p0 }
  0xc2   : > { %p6043_p8 = pmov %p6037_p0 }
  0xc3   : > { %4394 = dma.done.wait (%p6042_p7), [#allocation12], 16  }
  0xc4   : > { %4396 = vsyncadd (%p6043_p8), [#allocation12], 4294967280  ;;  %p596_p11 = scmp.lt.s32.totalorder %s4538_s25, 1  ;;  %s6044_s29 = sld [smem:[#allocation27_spill]]  ;;  %vm622_vm0 = vcmask 1043456   ;;  %vm609_vm1 = vcmask 228352  }
  0xc5   : > { %v605_v5 = vld [vmem:[#allocation2] sm:$0xff]  ;;  %vm4427_vm2 = vmmov 1   ;;  %v721_v8 = vld [vmem:[#allocation5 + $0x48] sm:$0xff]  ;;  %v723_v9 = vld [vmem:[#allocation5 + $0x58] sm:$0xff]  ;;  %v4428_v23 = vmov 0.0   ;;  %vm732_vm4 = vcmask 1046528  }
  0xc6   : > { %s597_s16 = scalar_select %p596_p11, %s4538_s25, 1  ;;  %vm4733_vm3 = vmpackc.low %vm622_vm0, %vm4427_vm2  ;;  %3315 = vmatprep.mubr.msk.f32.mxu0 %vm609_vm1, %v605_v5  ;;  %v720_v10 = vld [vmem:[#allocation5 + $0x40] sm:$0xff]  ;;  %v722_v11 = vld [vmem:[#allocation5 + $0x50] sm:$0xff]  ;;  %v3548_v12 = vpack.c.bf16 %v723_v9, %v721_v8  ;;  %830 = vmatprep.mubr.f32.mxu1 %v4428_v23  ;;  %vm955_vm5 = vcmask 1045504   ;;  %v4429_v5 = vmov 0.0|0.0   ;;  %vm1310_vm6 = vcmask 785408  }
  0xc7   : > { %v3550_v13 = vpack.c.bf16 %v722_v11, %v720_v10  ;;  %v606_v14 = vld [vmem:[#allocation2 + $0x8] sm:$0xff]  ;;  %v607_v15 = vld [vmem:[#allocation2 + $0x10] sm:$0xff]  ;;  %v608_v16 = vld [vmem:[#allocation2 + $0x18] sm:$0x3f]  ;;  %vm1863_vm8 = vcmask 113664   ;;  %s6047_s24 = sld [smem:[#allocation30_spill]] }
  0xc8   : > { %s3193_s18 = sshll.u32 %s597_s16, 5  ;;  %4021 = vmatprep.subr.bf16.mxu1 %v3548_v12  ;;  %v725_v17 = vld [vmem:[#allocation5 + $0x68] sm:$0xff]  ;;  %v727_v18 = vld [vmem:[#allocation5 + $0x78] sm:$0xf]  ;;  %v724_v20 = vld [vmem:[#allocation5 + $0x60] sm:$0xff]  ;;  %s6049_s16 = sld [smem:[#allocation31_spill]] }
  0xc9   : > { %4023 = vmatpush1.bf16.msra.mxu1 %v3550_v13  ;;  %v3552_v19 = vpack.c.bf16 %v727_v18, %v725_v17  ;;  %v726_v21 = vld [vmem:[#allocation5 + $0x70] sm:$0xf]  ;;  %v712_v24 = vld [vmem:[#allocation5 + $0x8] sm:$0xff]  ;;  %v714_v25 = vld [vmem:[#allocation5 + $0x18] sm:$0xff]  ;;  %vm4430_vm9 = vmmov 0   ;;  %vm2236_vm10 = vcmask 916480  }
  0xca   : > { %s600_s21 = scalar_lea.vmem %s6044_s29, %s3193_s18  ;;  %v3555_v22 = vpack.c.bf16 %v726_v21, %v724_v20  ;;  %v3558_v26 = vpack.c.bf16 %v714_v25, %v712_v24  ;;  %v711_v33 = vld [vmem:[#allocation5] sm:$0xff]  ;;  %v713_v34 = vld [vmem:[#allocation5 + $0x10] sm:$0xff]  ;;  %v716_v38 = vld [vmem:[#allocation5 + $0x28] sm:$0xff]  ;;  %s6050_s26 = sld [smem:[#allocation20_spill]] }
  0xcb   : > { %v601_v0 = vld [vmem:[%s600_s21] sm:$0xff]  ;;  %v602_v1 = vld [vmem:[%s600_s21 + $0x8] sm:$0xff]  ;;  %v603_v2 = vld [vmem:[%s600_s21 + $0x10] sm:$0xff]  ;;  %4022 = vmatprep.subr.msk.bf16.mxu1 %vm4733_vm3, %v3552_v19  ;;  %v3560_v45 = vpack.c.bf16 %v713_v34, %v711_v33  ;;  %s6051_s20 = sld [smem:[#allocation25_spill]]  ;;  %s3190_s2 = sshll.u32 %s4538_s25, 4 }
  0xcc   : > { %v3538_v3 = vpack.c.bf16 %v602_v1, %v601_v0  ;;  %v604_v4 = vld [vmem:[%s600_s21 + $0x18] sm:$0xf]  ;;  %v715_v47 = vld [vmem:[#allocation5 + $0x20] sm:$0xff]  ;;  %v717_v48 = vld [vmem:[#allocation5 + $0x30] sm:$0xf]  ;;  %s6052_s17 = sld [smem:[#allocation32_spill]] }
  0xcd   : > { %v3542_v6 = vpack.c.bf16 %v604_v4, %v603_v2  ;;  %4024 = vmatpush1.bf16.msk.msra.mxu1 %vm4733_vm3, %v3555_v22  ;;  %v718_v39 = vld [vmem:[#allocation5 + $0x38] sm:$0xf]  ;;  %v948_v51 = vld [vmem:[#allocation5 + $0x88] sm:$0xff]  ;;  %v3565_v55 = vpack.c.bf16 %v717_v48, %v715_v47  ;;  %v947_v57 = vld [vmem:[#allocation5 + $0x80] sm:$0xff]  ;;  %s6048_s27 = smov %s6047_s24  ;;  %s4431_s25 = smov [#allocation13]  }
  0xce   : > { %3539 = vmatprep.subr.bf16.mxu0 %v3538_v3  ;;  %3559 = vmatprep.subr.bf16.mxu1 %v3558_v26  ;;  %v3562_v46 = vpack.c.bf16 %v718_v39, %v716_v38  ;;  %v950_v52 = vld [vmem:[#allocation5 + $0x98] sm:$0xff]  ;;  %v949_v58 = vld [vmem:[#allocation5 + $0x90] sm:$0xff]  ;;  %v952_v59 = vld [vmem:[#allocation5 + $0xa8] sm:$0xff]  ;;  %s4341_s28 = sshll.u32 %s4431_s25, 4  ;;  %s4342_s28 = int_to_ptr.vmem [resolvable:$false] %s4341_s28 }
  0xcf   : > { %3541 = vmatpush3.bf16.msra.mxu0 %v3538_v3  ;;  %v3568_v56 = vpack.c.bf16 %v950_v52, %v948_v51  ;;  %v954_v60 = vld [vmem:[#allocation5 + $0xb8] sm:$0xf]  ;;  %v3570_v61 = vpack.c.bf16 %v949_v58, %v947_v57  ;;  %v951_v63 = vld [vmem:[#allocation5 + $0xa0] sm:$0xff]  ;;  %v953_v0 = vld [vmem:[#allocation5 + $0xb0] sm:$0xf]  ;;  %s4343_s29 = scalar_lea.vmem %s4342_s28, 32 }
  0xd0   : > { %3544 = vmatprep.subr.msk.bf16.mxu0 %vm4733_vm3, %v3542_v6  ;;  %v3572_v62 = vpack.c.bf16 %v954_v60, %v952_v59  ;;  %v3575_v1 = vpack.c.bf16 %v953_v0, %v951_v63  ;;  %v1282_v2 = vld [vmem:[%s5988_s6] sm:$0xff]  ;;  %v1283_v3 = vld [vmem:[%s5988_s6 + $0x8] sm:$0xff]  ;;  %v1284_v4 = vld [vmem:[%s5988_s6 + $0x10] sm:$0xff]  ;;  %s594_s13 = sand.u32 1, %s6050_s26  }
  0xd1   : > { %v1285_v8 = vld [vmem:[%s5988_s6 + $0x18] sm:$0xff]  ;;  %v1286_v10 = vld [vmem:[%s5988_s6 + $0x20] sm:$0xff]  ;;  %v1287_v11 = vld [vmem:[%s5988_s6 + $0x28] sm:$0xff]  ;;  %s595_s9 = scalar_lea.vmem [#allocation13], %s594_s13  ;;  %s2847_s18 = scalar_lea.sflag [#allocation4], %s594_s13 }
  0xd2   : > { %v3602_v9 = vpack.c.bf16 %v1285_v8, %v1284_v4  ;;  %v1291_v17 = vld [vmem:[%s5988_s6 + $0x48] sm:$0xff]  ;;  %v1293_v20 = vld [vmem:[%s5988_s6 + $0x58] sm:$0xff]  ;;  %v1296_v26 = vld [vmem:[%s5988_s6 + $0x70] sm:$0xff]  ;;  %s2859_s14 = sshll.u32 %s595_s9, 4  ;;  %s5940_s19 = scalar_lea.hbm %s6052_s17, %s3190_s2  ;;  %s5942_s14 = int_to_ptr.vmem [resolvable:$true] %s2859_s14 }
  0xd3   : > { %3547 = vmatpush3.bf16.msk.msra.mxu0 %vm4733_vm3, %v3542_v6  ;;  %v3599_v6 = vpack.c.bf16 %v1283_v3, %v1282_v2  ;;  %v1295_v24 = vld [vmem:[%s5988_s6 + $0x68] sm:$0xff]  ;;  %v1301_v33 = vld [vmem:[%s5988_s6 + $0x98] sm:$0xff]  ;;  %vm3779_vm7 = vmpackc.low %vm955_vm5, %vm4427_vm2  ;;  %s4337_s26 = scalar_lea.vmem %s5942_s14, 16  ;;  %p6053_p1 = scmp.ne.s32.totalorder %s6051_s20, 0 }
  0xd4   : > { %3549 = vmatprep.subr.bf16.mxu0 %v3548_v12  ;;  %v3605_v12 = vpack.c.bf16 %v1287_v11, %v1286_v10  ;;  %v1305_v7 = vld [vmem:[%s5988_s6 + $0xb8] sm:$0xff]  ;;  %p4338_p13 = scmp.ne.s32.totalorder %s5942_s14, %s4337_s26  ;;  %p4344_p5 = scmp.lt.s32.totalorder %s5942_s14, %s4342_s28 }
  0xd5   : > { %p4345_p10 = scmp.lt.s32.totalorder %s4343_s29, %s4337_s26 }
  0xd6   : > { %3316 = vmatmul.mubr.msk.f32.vlgmr.msra.gmra.mrb[0].mxu0 %vm609_vm1, %v606_v14  ;;  %v1289_v14 = vld [vmem:[%s5988_s6 + $0x38] sm:$0xff]  ;;  %p4339_p6 = pnand %p4338_p13, %p6053_p1 }
  0xd7   : > { %3318 = vmatprep.mubr.msk.f32.mxu0 %vm609_vm1, %v607_v15  ;;  %3551 = vmatpush1.bf16.msra.mxu0 %v3550_v13  ;;  %v1288_v13 = vld [vmem:[%s5988_s6 + $0x30] sm:$0xff]  ;;  %p4346_p0 = por %p4345_p10, %p4344_p5 }
  0xd8   : > { %3554 = vmatprep.subr.msk.bf16.mxu0 %vm4733_vm3, %v3552_v19  ;;  %v3608_v15 = vpack.c.bf16 %v1289_v14, %v1288_v13  ;;  %v1292_v19 = vld [vmem:[%s5988_s6 + $0x50] sm:$0xff]  ;;  %p4340_p9 = pneg %p4339_p6 }
  0xd9   : > { %v3614_v21 = vpack.c.bf16 %v1293_v20, %v1292_v19  ;;  %v1102_v19 = vld [vmem:[%s5986_s4] sm:$0xff]  ;;  %v1103_v20 = vld [vmem:[%s5986_s4 + $0x8] sm:$0xff] }
  0xda   : > { %3319 = vmatmul.mubr.msk.f32.gmra.mrb[2].mxu0 %vm609_vm1, %v608_v16  ;;  %v1290_v16 = vld [vmem:[%s5988_s6 + $0x40] sm:$0xff]  ;;  %p4347_p2 = pnand %p4346_p0, %p4340_p9 }
  0xdb   : > { %3557 = vmatpush1.bf16.msk.msra.mxu0 %vm4733_vm3, %v3555_v22  ;;  %818 = vmatprep.mubr.f32.mxu0 %v4428_v23  ;;  %v3611_v18 = vpack.c.bf16 %v1291_v17, %v1290_v16  ;;  %v1294_v22 = vld [vmem:[%s5988_s6 + $0x60] sm:$0xff] }
  0xdc   : > { %v3617_v25 = vpack.c.bf16 %v1295_v24, %v1294_v22  ;;  %v1194_v22 = vld [vmem:[#allocation7 + $0x8] sm:$0xff]  ;;  %v1304_v24 = vld [vmem:[%s5988_s6 + $0xb0] sm:$0xff] }
 0x1a9   : > { %v3317_v27 = vpop.f32.mrb[0].mxu0 }
 0x1aa   : > { %v734_v28 = vrot.slane %v3317_v27, 1  ;;  %v957_v29 = vrot.slane %v3317_v27, 2  ;;  %v692_v30 = vpop.f32.mrb[1].mxu0 }
 0x1ab   : > { %v733_v31 = vrot.slane %v692_v30, 1  ;;  %v956_v32 = vrot.slane %v692_v30, 2 }
 0x1ad   : > { %v735_v35 = vsel %vm732_vm4, %v733_v31, %v734_v28  ;;  %v958_v36 = vsel %vm955_vm5, %v956_v32, %v957_v29  ;;  %v3320_v37 = vpop.f32.mrb[2].mxu0  ;;  %v1300_v32 = vld [vmem:[%s5988_s6 + $0x90] sm:$0xff] }
 0x1ae   : > { %v738_v40 = vrot.slane %v3320_v37, 1  ;;  %v961_v41 = vrot.slane %v3320_v37, 2  ;;  %v702_v42 = vpop.f32.mrb[3].mxu0  ;;  %2999 = vmatmul.mubr.msk.f32.vlgmr.msra.gmra.mrb[4].mxu0 %vm609_vm1, %v735_v35  ;;  %v3626_v34 = vpack.c.bf16 %v1301_v33, %v1300_v32  ;;  %v1302_v35 = vld [vmem:[%s5988_s6 + $0xa0] sm:$0xff] }
 0x1af   : > { %v736_v43 = vrot.slane %v702_v42, 1  ;;  %v959_v44 = vrot.slane %v702_v42, 2  ;;  %824 = vmatprep.mubr.f32.mxu0 %v4428_v23 }
 0x1b1   : > { %v737_v49 = vsel %vm732_vm4, %v734_v28, %v736_v43  ;;  %v739_v50 = vsel %vm732_vm4, %v736_v43, %v738_v40  ;;  %v960_v53 = vsel %vm955_vm5, %v957_v29, %v959_v44  ;;  %v962_v54 = vsel %vm955_vm5, %v959_v44, %v961_v41  ;;  %v1298_v29 = vld [vmem:[%s5988_s6 + $0x80] sm:$0xff] }
 0x1b2   : > { %3000 = vmatmul.mubr.msk.f32.gmra.mrb[6].mxu0 %vm609_vm1, %v737_v49  ;;  %3001 = vmatmul.mubr.msk.f32.vlgmr.msra.gmra.mrb[0].mxu1 %vm609_vm1, %v739_v50 }
 0x1b3   : > { %3561 = vmatpush1.bf16.msra.mxu1 %v3560_v45  ;;  %836 = vmatprep.mubr.f32.mxu1 %v4428_v23  ;;  %v1074_v45 = vld [vmem:[%s5985_s3] sm:$0x3] }
 0x1b4   : > { %3564 = vmatprep.subr.msk.bf16.mxu1 %vm4733_vm3, %v3562_v46  ;;  %1180 = vmatprep.mubr.f32.mxu0 %v4428_v23 }
 0x1b6   : > { %3002 = vmatmul.mubr.msk.f32.gmra.mrb[2].mxu1 %vm609_vm1, %v738_v40 }
 0x1b7   : > { %3567 = vmatpush1.bf16.msk.msra.mxu1 %vm4733_vm3, %v3565_v55  ;;  %921 = vmatprep.mubr.f32.mxu1 %v4428_v23 }
 0x1b8   : > { %3569 = vmatprep.subr.bf16.mxu1 %v3568_v56 }
 0x1ba   : > { %3005 = vmatmul.mubr.msk.f32.vlgmr.msra.gmra.mrb[4].mxu1 %vm609_vm1, %v692_v30  ;;  %v1299_v30 = vld [vmem:[%s5988_s6 + $0x88] sm:$0xff] }
 0x1bb   : > { %927 = vmatprep.mubr.f32.mxu1 %v4428_v23  ;;  %3571 = vmatpush1.bf16.msra.mxu1 %v3570_v61  ;;  %v3623_v31 = vpack.c.bf16 %v1299_v30, %v1298_v29  ;;  %v1308_v29 = vld [vmem:[%s5988_s6 + $0xd0] sm:$0xff]  ;;  %v1309_v30 = vld [vmem:[%s5988_s6 + $0xd8] sm:$0xff] }
 0x1bc   : > { %3574 = vmatprep.subr.msk.bf16.mxu1 %vm4733_vm3, %v3572_v62 }
 0x1be   : > { %3006 = vmatmul.mubr.msk.f32.gmra.mrb[6].mxu1 %vm609_vm1, %v3317_v27  ;;  %v1297_v27 = vld [vmem:[%s5988_s6 + $0x78] sm:$0xff] }
 0x1bf   : > { %933 = vmatprep.mubr.f32.mxu1 %v4428_v23  ;;  %3577 = vmatpush1.bf16.msk.msra.mxu1 %vm4733_vm3, %v3575_v1  ;;  %v3620_v28 = vpack.c.bf16 %v1297_v27, %v1296_v26  ;;  %v1306_v26 = vld [vmem:[%s5988_s6 + $0xc0] sm:$0xff]  ;;  %v1307_v27 = vld [vmem:[%s5988_s6 + $0xc8] sm:$0xff] }
 0x1c0   : > { %3598 = vmatprep.subr.bf16.mxu1 %v4429_v5 }
 0x1c2   : > { %3007 = vmatmul.mubr.msk.f32.gmra.mrb[0].mxu1 %vm609_vm1, %v702_v42  ;;  %v1076_v42 = vlaneseq }
 0x1c3   : > { %939 = vmatprep.mubr.f32.mxu1 %v4428_v23 }
 0x1c4   : > { %v4870_v43 = vshrl.u32 %v1076_v42, 7 }
 0x1c6   : > { %3008 = vmatmul.mubr.msk.f32.gmra.mrb[2].mxu1 %vm609_vm1, %v3320_v37  ;;  %v1078_v44 = vsub.s32 0, %v4870_v43  ;;  %v1082_v46 = vsub.s32 1, %v4870_v43  ;;  %v1862_v43 = vld [vmem:[%s5992_s10] sm:$0x7f] }
 0x1c7   : > { %1041 = vmatprep.mubr.f32.mxu1 %v4428_v23 }
 0x1c8   : > { %v1079_v49 = vrot.slane %v1074_v45, %v1078_v44  ;;  %v1083_v52 = vrot.slane %v1074_v45, %v1082_v46  ;;  %v1394_v45 = vld [vmem:[%s5989_s7 + $0x10] sm:$0xff] }
 0x1ca   : > { %3011 = vmatmul.mubr.msk.f32.vlgmr.msra.gmra.mrb[4].mxu1 %vm609_vm1, %v958_v36  ;;  %v1303_v36 = vld [vmem:[%s5988_s6 + $0xa8] sm:$0xff] }
 0x1cb   : > { %1047 = vmatprep.mubr.f32.mxu1 %v4428_v23  ;;  %3600 = vmatpush1.bf16.msra.mxu1 %v3599_v6  ;;  %v3629_v37 = vpack.c.bf16 %v1303_v36, %v1302_v35  ;;  %v1392_v36 = vld [vmem:[%s5989_s7] sm:$0xff] }
 0x1cc   : > { %3601 = vmatprep.subr.bf16.mxu1 %v4429_v5 }
 0x1ce   : > { %3012 = vmatmul.mubr.msk.f32.gmra.mrb[6].mxu1 %vm609_vm1, %v960_v53 }
 0x1cf   : > { %1053 = vmatprep.mubr.f32.mxu1 %v4428_v23  ;;  %3603 = vmatpush1.bf16.msra.mxu1 %v3602_v9 }
 0x1d0   : > { %3604 = vmatprep.subr.bf16.mxu1 %v4429_v5 }
 0x1d2   : > { %3013 = vmatmul.mubr.msk.f32.gmra.mrb[0].mxu1 %vm609_vm1, %v962_v54 }
 0x1d3   : > { %1059 = vmatprep.mubr.f32.mxu1 %v4428_v23  ;;  %3606 = vmatpush1.bf16.msra.mxu1 %v3605_v12 }
 0x1d4   : > { %3607 = vmatprep.subr.bf16.mxu1 %v4429_v5 }
 0x1d6   : > { %3014 = vmatmul.mubr.msk.f32.gmra.mrb[2].mxu1 %vm609_vm1, %v961_v41 }
 0x1d7   : > { %3609 = vmatpush1.bf16.msra.mxu1 %v3608_v15 }
 0x1d8   : > { %3610 = vmatprep.subr.bf16.mxu1 %v4429_v5 }
 0x1db   : > { %3612 = vmatpush1.bf16.msra.mxu1 %v3611_v18 }
 0x1dc   : > { %3613 = vmatprep.subr.bf16.mxu1 %v4429_v5 }
 0x1df   : > { %3615 = vmatpush1.bf16.msra.mxu1 %v3614_v21  ;;  %v1193_v21 = vld [vmem:[#allocation7] sm:$0xff] }
 0x1e0   : > { %3616 = vmatprep.subr.bf16.mxu1 %v4429_v5 }
 0x1e3   : > { %3618 = vmatpush1.bf16.msra.mxu1 %v3617_v25  ;;  %v3632_v25 = vpack.c.bf16 %v1305_v7, %v1304_v24  ;;  %v1418_v7 = vld [vmem:[%s5989_s7 + $0xd0] sm:$0xff] }
 0x1e4   : > { %3619 = vmatprep.subr.bf16.mxu1 %v4429_v5 }
 0x1e7   : > { %3621 = vmatpush1.bf16.msra.mxu1 %v3620_v28  ;;  %v3635_v28 = vpack.c.bf16 %v1307_v27, %v1306_v26  ;;  %v3028_v27 = vld [vmem:[%s5990_s8 + $0x108] sm:$0xff] }
 0x1e8   : > { %3622 = vmatprep.subr.bf16.mxu1 %v4429_v5 }
 0x1eb   : > { %3624 = vmatpush1.bf16.msra.mxu1 %v3623_v31  ;;  %v3638_v31 = vpack.c.bf16 %v1309_v30, %v1308_v29  ;;  %v3027_v29 = vld [vmem:[%s5990_s8 + $0x100] sm:$0xff] }
 0x1ec   : > { %3625 = vmatprep.subr.bf16.mxu1 %v4429_v5 }
 0x1ef   : > { %3627 = vmatpush1.bf16.msra.mxu1 %v3626_v34 }
 0x1f0   : > { %3628 = vmatprep.subr.bf16.mxu1 %v4429_v5 }
 0x1f3   : > { %3630 = vmatpush1.bf16.msra.mxu1 %v3629_v37  ;;  %v1393_v37 = vld [vmem:[%s5989_s7 + $0x8] sm:$0xff] }
 0x1f4   : > { %3631 = vmatprep.subr.bf16.mxu1 %v4429_v5  ;;  %v3641_v42 = vpack.c.bf16 %v1393_v37, %v1392_v36  ;;  %v3031_v36 = vld [vmem:[%s5990_s8 + $0x120] sm:$0xff]  ;;  %v3033_v37 = vld [vmem:[%s5990_s8 + $0x130] sm:$0xff] }
 0x1f7   : > { %3633 = vmatpush1.bf16.msra.mxu1 %v3632_v25  ;;  %v1419_v25 = vld [vmem:[%s5989_s7 + $0xd8] sm:$0xff] }
 0x1f8   : > { %3634 = vmatprep.subr.bf16.mxu1 %v4429_v5  ;;  %v3680_v26 = vpack.c.bf16 %v1419_v25, %v1418_v7 }
 0x1fb   : > { %3636 = vmatpush1.bf16.msra.mxu1 %v3635_v28  ;;  %v3030_v28 = vld [vmem:[%s5990_s8 + $0x118] sm:$0xff] }
 0x1fc   : > { %3637 = vmatprep.subr.bf16.mxu1 %v4429_v5  ;;  %v3682_v30 = vpack.c.bf16 %v3030_v28, %v3028_v27  ;;  %v1499_v27 = vld [vmem:[%s5990_s8 + $0x10] sm:$0xff] }
 0x1ff   : > { %3639 = vmatpush1.bf16.msra.mxu1 %v3638_v31  ;;  %v3029_v31 = vld [vmem:[%s5990_s8 + $0x110] sm:$0xff] }
 0x200   : > { %3640 = vmatprep.subr.bf16.mxu1 %v4429_v5 }
 0x281   : > { %v820_v38 = vpop.f32.mrb[4].mxu0 }
 0x282   : > { %v822_v39 = vpop.f32.mrb[5].mxu0 }
 0x285   : > { %v826_v40 = vpop.f32.mrb[6].mxu0 }
 0x286   : > { %v828_v41 = vpop.f32.mrb[7].mxu0 }
 0x29d   : > { %v1043_v47 = vpop.f32.mrb[4].mxu1 }
 0x29e   : > { %v4025_v48 = vadd.f32 %v1043_v47, %v820_v38  ;;  %v1045_v50 = vpop.f32.mrb[5].mxu1  ;;  %v1395_v47 = vld [vmem:[%s5989_s7 + $0x18] sm:$0xff] }
 0x29f   : > { %v4026_v51 = vadd.f32 %v1045_v50, %v822_v39 }
 0x2a0   : > { %v1086_v54 = vadd.f32 %v4025_v48, %v1079_v49 }
 0x2a1   : > { %v1049_v53 = vpop.f32.mrb[6].mxu1  ;;  %v1087_v57 = vadd.f32 %v4026_v51, %v1083_v52 }
 0x2a2   : > { %v4027_v55 = vadd.f32 %v1049_v53, %v826_v40  ;;  %v1051_v56 = vpop.f32.mrb[7].mxu1  ;;  %v1094_v62 = vmax.f32 %v1086_v54, 0.0  ;;  %v1396_v53 = vld [vmem:[%s5989_s7 + $0x20] sm:$0xff]  ;;  %v1397_v54 = vld [vmem:[%s5989_s7 + $0x28] sm:$0xff] }
 0x2a3   : > { %v4028_v58 = vadd.f32 %v1051_v56, %v828_v41  ;;  %v1095_v1 = vmax.f32 %v1087_v57, 0.0  ;;  %v1398_v56 = vld [vmem:[%s5989_s7 + $0x30] sm:$0xff]  ;;  %v1399_v57 = vld [vmem:[%s5989_s7 + $0x38] sm:$0xff] }
 0x2a4   : > { %v1088_v59 = vadd.f32 %v4027_v55, %v1079_v49  ;;  %v3647_v55 = vpack.c.bf16 %v1397_v54, %v1396_v53  ;;  %v3044_v53 = vld [vmem:[%s5990_s8 + $0x188] sm:$0xff]  ;;  %v3046_v54 = vld [vmem:[%s5990_s8 + $0x198] sm:$0xff] }
 0x2a5   : > { %v1089_v60 = vadd.f32 %v4028_v58, %v1083_v52  ;;  %v1055_v61 = vpop.f32.mrb[0].mxu1  ;;  %v3650_v58 = vpack.c.bf16 %v1399_v57, %v1398_v56  ;;  %v3698_v56 = vpack.c.bf16 %v3046_v54, %v3044_v53  ;;  %v3043_v57 = vld [vmem:[%s5990_s8 + $0x180] sm:$0xff]  ;;  %v1512_v53 = vld [vmem:[%s5990_s8 + $0x78] sm:$0xff] }
 0x2a6   : > { %v1096_v63 = vmax.f32 %v1088_v59, 0.0  ;;  %v1057_v0 = vpop.f32.mrb[1].mxu1  ;;  %v1090_v4 = vadd.f32 %v1079_v49, %v1055_v61  ;;  %v1400_v59 = vld [vmem:[%s5989_s7 + $0x40] sm:$0xff] }
 0x2a7   : > { %v1097_v2 = vmax.f32 %v1089_v60, 0.0  ;;  %v1091_v6 = vadd.f32 %v1083_v52, %v1057_v0  ;;  %v1401_v60 = vld [vmem:[%s5989_s7 + $0x48] sm:$0xff] }
 0x2a8   : > { %v3580_v3 = vpack.c.bf16 %v1096_v63, %v1094_v62  ;;  %v1098_v13 = vmax.f32 %v1090_v4, 0.0  ;;  %v3653_v61 = vpack.c.bf16 %v1401_v60, %v1400_v59  ;;  %v1402_v62 = vld [vmem:[%s5989_s7 + $0x50] sm:$0xff]  ;;  %v1403_v63 = vld [vmem:[%s5989_s7 + $0x58] sm:$0xff]  ;;  %v3048_v59 = vld [vmem:[%s5990_s8 + $0x1a8] sm:$0xff] }
 0x2a9   : > { %v1061_v8 = vpop.f32.mrb[2].mxu1  ;;  %v3578_v9 = vpack.c.bf16 %v1097_v2, %v1095_v1  ;;  %v1099_v15 = vmax.f32 %v1091_v6, 0.0  ;;  %v3656_v0 = vpack.c.bf16 %v1403_v63, %v1402_v62  ;;  %v1404_v1 = vld [vmem:[%s5989_s7 + $0x60] sm:$0xff]  ;;  %v1405_v2 = vld [vmem:[%s5989_s7 + $0x68] sm:$0xff]  ;;  %v1406_v4 = vld [vmem:[%s5989_s7 + $0x70] sm:$0xff] }
 0x2aa   : > { %v1092_v10 = vadd.f32 %v1079_v49, %v1061_v8  ;;  %v1063_v11 = vpop.f32.mrb[3].mxu1  ;;  %v1407_v6 = vld [vmem:[%s5989_s7 + $0x78] sm:$0xff]  ;;  %v3047_v63 = vld [vmem:[%s5990_s8 + $0x1a0] sm:$0xff] }
 0x2ab   : > { %v1093_v12 = vadd.f32 %v1083_v52, %v1063_v11  ;;  %3579 = vmatprep.subr.bf16.mxu0 %v3578_v9  ;;  %v3644_v52 = vpack.c.bf16 %v1395_v47, %v1394_v45  ;;  %v3662_v8 = vpack.c.bf16 %v1407_v6, %v1406_v4  ;;  %v3037_v45 = vld [vmem:[%s5990_s8 + $0x150] sm:$0xff]  ;;  %v3040_v47 = vld [vmem:[%s5990_s8 + $0x168] sm:$0xff]  ;;  %v3050_v60 = vld [vmem:[%s5990_s8 + $0x1b8] sm:$0xff] }
 0x2ac   : > { %v1100_v14 = vmax.f32 %v1092_v10, 0.0  ;;  %3581 = vmatpush1.bf16.msra.mxu0 %v3580_v3  ;;  %v1409_v10 = vld [vmem:[%s5989_s7 + $0x88] sm:$0xff]  ;;  %v3702_v62 = vpack.c.bf16 %v3050_v60, %v3048_v59  ;;  %v3051_v6 = vld [vmem:[%s5990_s8 + $0x1c0] sm:$0xff]  ;;  %v1516_v59 = vld [vmem:[%s5990_s8 + $0x98] sm:$0xff] }
 0x2ad   : > { %v1101_v16 = vmax.f32 %v1093_v12, 0.0  ;;  %v1410_v12 = vld [vmem:[%s5989_s7 + $0x90] sm:$0xff] }
 0x2ae   : > { %v3585_v17 = vpack.c.bf16 %v1100_v14, %v1098_v13  ;;  %v1411_v13 = vld [vmem:[%s5989_s7 + $0x98] sm:$0xff] }
 0x2af   : > { %v3582_v18 = vpack.c.bf16 %v1101_v16, %v1099_v15  ;;  %v3668_v14 = vpack.c.bf16 %v1411_v13, %v1410_v12  ;;  %v1412_v15 = vld [vmem:[%s5989_s7 + $0xa0] sm:$0xff]  ;;  %v1413_v16 = vld [vmem:[%s5989_s7 + $0xa8] sm:$0xff] }
 0x2b0   : > { %v3055_v13 = vld [vmem:[%s5990_s8 + $0x1e0] sm:$0xff] }
 0x2b1   : > { %3584 = vmatprep.subr.msk.bf16.mxu0 %vm4733_vm3, %v3582_v18 }
 0x2b2   : > { %3587 = vmatpush1.bf16.msk.msra.mxu0 %vm4733_vm3, %v3585_v17 }
 0x2b3   : > { %3589 = vmatprep.subr.bf16.mxu0 %v3578_v9  ;;  %v1408_v9 = vld [vmem:[%s5989_s7 + $0x80] sm:$0xff] }
 0x2b4   : > { %v3665_v11 = vpack.c.bf16 %v1409_v10, %v1408_v9  ;;  %v3056_v10 = vld [vmem:[%s5990_s8 + $0x1e8] sm:$0xff] }
 0x2b5   : > { %3017 = vmatmul.mubr.msk.f32.vlgmr.msra.gmra.mrb[8].mxu0 %vm609_vm1, %v1102_v19  ;;  %v1415_v19 = vld [vmem:[%s5989_s7 + $0xb8] sm:$0xff] }
 0x2b6   : > { %3591 = vmatpush1.bf16.msra.mxu0 %v3580_v3  ;;  %1186 = vmatprep.mubr.f32.mxu0 %v4428_v23  ;;  %v3659_v3 = vpack.c.bf16 %v1405_v2, %v1404_v1  ;;  %v3052_v2 = vld [vmem:[%s5990_s8 + $0x1c8] sm:$0xff] }
 0x2b7   : > { %3594 = vmatprep.subr.msk.bf16.mxu0 %vm4733_vm3, %v3582_v18  ;;  %v1414_v18 = vld [vmem:[%s5989_s7 + $0xb0] sm:$0xff] }
 0x2b9   : > { %3018 = vmatmul.mubr.msk.f32.gmra.mrb[10].mxu0 %vm609_vm1, %v1103_v20  ;;  %v3674_v20 = vpack.c.bf16 %v1415_v19, %v1414_v18 }
 0x2ba   : > { %3597 = vmatpush1.bf16.msk.msra.mxu0 %vm4733_vm3, %v3585_v17  ;;  %1265 = vmatprep.mubr.f32.mxu0 %v4428_v23  ;;  %v3671_v17 = vpack.c.bf16 %v1413_v16, %v1412_v15  ;;  %v1498_v16 = vld [vmem:[%s5990_s8 + $0x8] sm:$0xff] }
 0x2bb   : > { %3683 = vmatprep.subr.bf16.mxu0 %v3682_v30 }
 0x2bd   : > { %3021 = vmatmul.mubr.msk.f32.vlgmr.msra.gmra.mrb[12].mxu0 %vm609_vm1, %v1193_v21  ;;  %v1416_v21 = vld [vmem:[%s5989_s7 + $0xc0] sm:$0xff] }
 0x2be   : > { %1271 = vmatprep.mubr.f32.mxu0 %v4428_v23 }
 0x2c1   : > { %3022 = vmatmul.mubr.msk.f32.gmra.mrb[14].mxu0 %vm609_vm1, %v1194_v22  ;;  %v1417_v22 = vld [vmem:[%s5989_s7 + $0xc8] sm:$0xff] }
 0x2c2   : > { %1633 = vmatprep.mubr.f32.mxu0 %v4428_v23  ;;  %v3677_v24 = vpack.c.bf16 %v1417_v22, %v1416_v21 }
 0x388   : > { %v1182_v32 = vpop.f32.mrb[8].mxu0 }
 0x389   : > { %v1184_v33 = vpop.f32.mrb[9].mxu0 }
 0x38c   : > { %v1188_v34 = vpop.f32.mrb[10].mxu0 }
 0x38d   : > { %v1190_v35 = vpop.f32.mrb[11].mxu0 }
 0x390   : > { %v1267_v38 = vpop.f32.mrb[12].mxu0 }
 0x391   : > { %v4930_v39 = vmax.f32 %v1182_v32, %v1267_v38  ;;  %v1269_v40 = vpop.f32.mrb[13].mxu0  ;;  %v3032_v32 = vld [vmem:[%s5990_s8 + $0x128] sm:$0xff] }
 0x392   : > { %v1279_v41 = vmax.f32 %v1184_v33, %v1269_v40  ;;  %v3034_v33 = vld [vmem:[%s5990_s8 + $0x138] sm:$0xff]  ;;  %v3036_v38 = vld [vmem:[%s5990_s8 + $0x148] sm:$0xff]  ;;  %v3688_v40 = vpack.c.bf16 %v3033_v37, %v3031_v36 }
 0x394   : > { %v1273_v48 = vpop.f32.mrb[14].mxu0  ;;  %3023 = vmatprep.mubr.msk.f32.mxu1 %vm1310_vm6, %v1279_v41 }
 0x395   : > { %v4939_v49 = vmax.f32 %v1188_v34, %v1273_v48  ;;  %v1275_v50 = vpop.f32.mrb[15].mxu0  ;;  %1382 = vmatmul.mubr.f32.vlgmr.msra.gmra.mrb[8].mxu1 %v4930_v39  ;;  %v3684_v34 = vpack.c.bf16 %v3029_v31, %v3027_v29  ;;  %v3042_v48 = vld [vmem:[%s5990_s8 + $0x178] sm:$0xff]  ;;  %v1502_v31 = vld [vmem:[%s5990_s8 + $0x28] sm:$0xff] }
 0x396   : > { %v4942_v51 = vmax.f32 %v1190_v35, %v1275_v50  ;;  %3642 = vmatpush1.bf16.msra.mxu1 %v3641_v42  ;;  %v3686_v35 = vpack.c.bf16 %v3034_v33, %v3032_v32  ;;  %v3035_v42 = vld [vmem:[%s5990_s8 + $0x140] sm:$0xff]  ;;  %v3694_v50 = vpack.c.bf16 %v3042_v48, %v3040_v47  ;;  %v1504_v32 = vld [vmem:[%s5990_s8 + $0x38] sm:$0xff] }
 0x397   : > { %3643 = vmatprep.subr.bf16.mxu1 %v4429_v5  ;;  %3685 = vmatpush1.bf16.msra.mxu0 %v3684_v34 }
 0x398   : > { %3024 = vmatprep.mubr.msk.f32.mxu1 %vm1310_vm6, %v4942_v51  ;;  %3687 = vmatprep.subr.bf16.mxu0 %v3686_v35 }
 0x399   : > { %1387 = vmatmul.mubr.f32.gmra.mrb[10].mxu1 %v4939_v49 }
 0x39a   : > { %3645 = vmatpush1.bf16.msra.mxu1 %v3644_v52  ;;  %3025 = vmatprep.mubr.msk.f32.mxu1 %vm1310_vm6, %v1279_v41  ;;  %v3041_v52 = vld [vmem:[%s5990_s8 + $0x170] sm:$0xff] }
 0x39b   : > { %3646 = vmatprep.subr.bf16.mxu1 %v4429_v5  ;;  %3689 = vmatpush1.bf16.msra.mxu0 %v3688_v40  ;;  %v1503_v40 = vld [vmem:[%s5990_s8 + $0x30] sm:$0xff] }
 0x39e   : > { %3648 = vmatpush1.bf16.msra.mxu1 %v3647_v55 }
 0x39f   : > { %3649 = vmatprep.subr.bf16.mxu1 %v4429_v5 }
 0x3a2   : > { %3651 = vmatpush1.bf16.msra.mxu1 %v3650_v58  ;;  %v3045_v58 = vld [vmem:[%s5990_s8 + $0x190] sm:$0xff] }
 0x3a3   : > { %3652 = vmatprep.subr.bf16.mxu1 %v4429_v5 }
 0x3a6   : > { %3654 = vmatpush1.bf16.msra.mxu1 %v3653_v61  ;;  %v3700_v61 = vpack.c.bf16 %v3045_v58, %v3043_v57  ;;  %v1511_v57 = vld [vmem:[%s5990_s8 + $0x70] sm:$0xff]  ;;  %v1514_v58 = vld [vmem:[%s5990_s8 + $0x88] sm:$0xff] }
 0x3a7   : > { %3655 = vmatprep.subr.bf16.mxu1 %v4429_v5 }
 0x3aa   : > { %3657 = vmatpush1.bf16.msra.mxu1 %v3656_v0  ;;  %v3049_v0 = vld [vmem:[%s5990_s8 + $0x1b0] sm:$0xff] }
 0x3ab   : > { %3658 = vmatprep.subr.bf16.mxu1 %v4429_v5  ;;  %v3704_v1 = vpack.c.bf16 %v3049_v0, %v3047_v63  ;;  %v1515_v63 = vld [vmem:[%s5990_s8 + $0x90] sm:$0xff]  ;;  %v1518_v0 = vld [vmem:[%s5990_s8 + $0xa8] sm:$0xff] }
 0x3ae   : > { %3660 = vmatpush1.bf16.msra.mxu1 %v3659_v3  ;;  %v3054_v3 = vld [vmem:[%s5990_s8 + $0x1d8] sm:$0xff] }
 0x3af   : > { %3661 = vmatprep.subr.bf16.mxu1 %v4429_v5  ;;  %v3706_v4 = vpack.c.bf16 %v3054_v3, %v3052_v2 }
 0x3b2   : > { %3663 = vmatpush1.bf16.msra.mxu1 %v3662_v8  ;;  %v3053_v8 = vld [vmem:[%s5990_s8 + $0x1d0] sm:$0xff] }
 0x3b3   : > { %3664 = vmatprep.subr.bf16.mxu1 %v4429_v5  ;;  %v3708_v9 = vpack.c.bf16 %v3053_v8, %v3051_v6  ;;  %v1519_v6 = vld [vmem:[%s5990_s8 + $0xb0] sm:$0xff]  ;;  %v1522_v8 = vld [vmem:[%s5990_s8 + $0xc8] sm:$0xff] }
 0x3b6   : > { %3666 = vmatpush1.bf16.msra.mxu1 %v3665_v11  ;;  %v3058_v11 = vld [vmem:[%s5990_s8 + $0x1f8] sm:$0xff] }
 0x3b7   : > { %3667 = vmatprep.subr.bf16.mxu1 %v4429_v5  ;;  %v3710_v12 = vpack.c.bf16 %v3058_v11, %v3056_v10 }
 0x3ba   : > { %3669 = vmatpush1.bf16.msra.mxu1 %v3668_v14  ;;  %v3057_v14 = vld [vmem:[%s5990_s8 + $0x1f0] sm:$0xff] }
 0x3bb   : > { %3670 = vmatprep.subr.bf16.mxu1 %v4429_v5  ;;  %v3712_v15 = vpack.c.bf16 %v3057_v14, %v3055_v13  ;;  %v1523_v13 = vld [vmem:[%s5990_s8 + $0xd0] sm:$0xff]  ;;  %v1526_v14 = vld [vmem:[%s5990_s8 + $0xe8] sm:$0xff] }
 0x3be   : > { %3672 = vmatpush1.bf16.msra.mxu1 %v3671_v17  ;;  %v1500_v17 = vld [vmem:[%s5990_s8 + $0x18] sm:$0xff] }
 0x3bf   : > { %3673 = vmatprep.subr.bf16.mxu1 %v4429_v5  ;;  %v3714_v18 = vpack.c.bf16 %v1500_v17, %v1498_v16 }
 0x3c2   : > { %3675 = vmatpush1.bf16.msra.mxu1 %v3674_v20 }
 0x3c3   : > { %3676 = vmatprep.subr.bf16.mxu1 %v4429_v5 }
 0x3c6   : > { %3678 = vmatpush1.bf16.msra.mxu1 %v3677_v24 }
 0x3c7   : > { %3679 = vmatprep.subr.bf16.mxu1 %v4429_v5 }
 0x3ca   : > { %3681 = vmatpush1.bf16.msra.mxu1 %v3680_v26  ;;  %v1497_v26 = vld [vmem:[%s5990_s8] sm:$0xff] }
 0x3cb   : > { %v3716_v33 = vpack.c.bf16 %v1499_v27, %v1497_v26  ;;  %v3061_v26 = vld [vmem:[%s5990_s8 + $0x210] sm:$0xff]  ;;  %v3064_v27 = vld [vmem:[%s5990_s8 + $0x228] sm:$0xff] }
 0x3cd   : > { %1485 = vmatmul.mubr.f32.vlgmr.msra.gmra.mrb[12].mxu1 %v4930_v39  ;;  %v3038_v39 = vld [vmem:[%s5990_s8 + $0x158] sm:$0xff] }
 0x3ce   : > { %3026 = vmatprep.mubr.msk.f32.mxu1 %vm1310_vm6, %v4942_v51  ;;  %v3690_v41 = vpack.c.bf16 %v3038_v39, %v3036_v38  ;;  %v3039_v51 = vld [vmem:[%s5990_s8 + $0x160] sm:$0xff]  ;;  %v3718_v38 = vpack.c.bf16 %v1504_v32, %v1502_v31 }
 0x3cf   : > { %v3696_v55 = vpack.c.bf16 %v3041_v52, %v3039_v51  ;;  %v1501_v39 = vld [vmem:[%s5990_s8 + $0x20] sm:$0xff]  ;;  %v1507_v51 = vld [vmem:[%s5990_s8 + $0x50] sm:$0xff]  ;;  %v1510_v52 = vld [vmem:[%s5990_s8 + $0x68] sm:$0xff] }
 0x3d0   : > { %3691 = vmatprep.subr.bf16.mxu0 %v3690_v41  ;;  %v3720_v48 = vpack.c.bf16 %v1503_v40, %v1501_v39  ;;  %v3063_v32 = vld [vmem:[%s5990_s8 + $0x220] sm:$0xff]  ;;  %v3069_v40 = vld [vmem:[%s5990_s8 + $0x250] sm:$0xff] }
 0x3d1   : > { %1490 = vmatmul.mubr.f32.gmra.mrb[14].mxu1 %v4939_v49  ;;  %v3692_v49 = vpack.c.bf16 %v3037_v45, %v3035_v42  ;;  %v1506_v42 = vld [vmem:[%s5990_s8 + $0x48] sm:$0xff]  ;;  %v1508_v45 = vld [vmem:[%s5990_s8 + $0x58] sm:$0xff]  ;;  %v3067_v39 = vld [vmem:[%s5990_s8 + $0x240] sm:$0xff] }
 0x3d2   : > { %1937 = vmatprep.mubr.f32.mxu1 %v4428_v23 }
 0x3d3   : > { %3693 = vmatpush1.bf16.msra.mxu0 %v3692_v49  ;;  %v3722_v49 = vpack.c.bf16 %v1508_v45, %v1506_v42  ;;  %v3756_v42 = vpack.c.bf16 %v3069_v40, %v3067_v39  ;;  %v2028_v39 = vld [vmem:[%s5994_s12 + $0x38] sm:$0xff] }
 0x3d4   : > { %3695 = vmatprep.subr.bf16.mxu0 %v3694_v50  ;;  %v1505_v50 = vld [vmem:[%s5990_s8 + $0x40] sm:$0xff] }
 0x3d5   : > { %v3724_v54 = vpack.c.bf16 %v1507_v51, %v1505_v50  ;;  %v3076_v50 = vld [vmem:[%s5990_s8 + $0x288] sm:$0xff]  ;;  %v3078_v51 = vld [vmem:[%s5990_s8 + $0x298] sm:$0xff] }
 0x3d7   : > { %3697 = vmatpush1.bf16.msra.mxu0 %v3696_v55  ;;  %v3726_v55 = vpack.c.bf16 %v1512_v53, %v1510_v52  ;;  %v3762_v53 = vpack.c.bf16 %v3078_v51, %v3076_v50  ;;  %v2033_v50 = vld [vmem:[%s5994_s12 + $0x60] sm:$0xff]  ;;  %v2034_v51 = vld [vmem:[%s5994_s12 + $0x68] sm:$0xff] }
 0x3d8   : > { %3699 = vmatprep.subr.bf16.mxu0 %v3698_v56  ;;  %v1509_v56 = vld [vmem:[%s5990_s8 + $0x60] sm:$0xff] }
 0x3d9   : > { %v3728_v60 = vpack.c.bf16 %v1511_v57, %v1509_v56  ;;  %v3080_v56 = vld [vmem:[%s5990_s8 + $0x2a8] sm:$0xff]  ;;  %v3082_v57 = vld [vmem:[%s5990_s8 + $0x2b8] sm:$0xff] }
 0x3db   : > { %3701 = vmatpush1.bf16.msra.mxu0 %v3700_v61  ;;  %v3730_v61 = vpack.c.bf16 %v1516_v59, %v1514_v58  ;;  %v3766_v59 = vpack.c.bf16 %v3082_v57, %v3080_v56  ;;  %v2037_v56 = vld [vmem:[%s5994_s12 + $0x80] sm:$0xff]  ;;  %v2038_v57 = vld [vmem:[%s5994_s12 + $0x88] sm:$0xff] }
 0x3dc   : > { %3703 = vmatprep.subr.bf16.mxu0 %v3702_v62  ;;  %v1513_v62 = vld [vmem:[%s5990_s8 + $0x80] sm:$0xff] }
 0x3dd   : > { %v3732_v2 = vpack.c.bf16 %v1515_v63, %v1513_v62  ;;  %v3084_v62 = vld [vmem:[%s5990_s8 + $0x2c8] sm:$0xff]  ;;  %v3086_v63 = vld [vmem:[%s5990_s8 + $0x2d8] sm:$0xff] }
 0x3df   : > { %3705 = vmatpush1.bf16.msra.mxu0 %v3704_v1  ;;  %v1520_v1 = vld [vmem:[%s5990_s8 + $0xb8] sm:$0xff] }
 0x3e0   : > { %3707 = vmatprep.subr.bf16.mxu0 %v3706_v4  ;;  %v3734_v3 = vpack.c.bf16 %v1520_v1, %v1518_v0  ;;  %v1517_v4 = vld [vmem:[%s5990_s8 + $0xa0] sm:$0xff]  ;;  %v3770_v1 = vpack.c.bf16 %v3086_v63, %v3084_v62  ;;  %v2042_v63 = vld [vmem:[%s5994_s12 + $0xa8] sm:$0xff] }
 0x3e1   : > { %v3736_v10 = vpack.c.bf16 %v1519_v6, %v1517_v4  ;;  %v3088_v4 = vld [vmem:[%s5990_s8 + $0x2e8] sm:$0xff]  ;;  %v3090_v6 = vld [vmem:[%s5990_s8 + $0x2f8] sm:$0xff]  ;;  %v2041_v62 = vld [vmem:[%s5994_s12 + $0xa0] sm:$0xff] }
 0x3e3   : > { %3709 = vmatpush1.bf16.msra.mxu0 %v3708_v9  ;;  %v1524_v9 = vld [vmem:[%s5990_s8 + $0xd8] sm:$0xff] }
 0x3e4   : > { %3711 = vmatprep.subr.bf16.mxu0 %v3710_v12  ;;  %v3738_v11 = vpack.c.bf16 %v1524_v9, %v1522_v8  ;;  %v1521_v12 = vld [vmem:[%s5990_s8 + $0xc0] sm:$0xff]  ;;  %v3774_v9 = vpack.c.bf16 %v3090_v6, %v3088_v4  ;;  %v2046_v6 = vld [vmem:[%s5994_s12 + $0xc8] sm:$0xff] }
 0x3e5   : > { %v3740_v16 = vpack.c.bf16 %v1523_v13, %v1521_v12  ;;  %v1842_v13 = vld [vmem:[#allocation8] sm:$0x3]  ;;  %v2045_v4 = vld [vmem:[%s5994_s12 + $0xc0] sm:$0xff] }
 0x3e7   : > { %3713 = vmatpush1.bf16.msra.mxu0 %v3712_v15  ;;  %v1528_v15 = vld [vmem:[%s5990_s8 + $0xf8] sm:$0xff] }
 0x3e8   : > { %3715 = vmatprep.subr.bf16.mxu0 %v3714_v18  ;;  %v3742_v17 = vpack.c.bf16 %v1528_v15, %v1526_v14  ;;  %v1525_v18 = vld [vmem:[%s5990_s8 + $0xe0] sm:$0xff]  ;;  %v1847_v14 = vrot.slane %v1842_v13, %v1078_v44 }
 0x468   : > { %v1383_v19 = vpop.f32.mrb[8].mxu1 }
 0x469   : > { %v1385_v20 = vpop.f32.mrb[9].mxu1 }
 0x46a   : > { %v3060_v20 = vld [vmem:[%s5990_s8 + $0x208] sm:$0xff] }
 0x46c   : > { %v1388_v21 = vpop.f32.mrb[10].mxu1 }
 0x46d   : > { %v1390_v22 = vpop.f32.mrb[11].mxu1 }
 0x4a0   : > { %v1486_v24 = vpop.f32.mrb[12].mxu1 }
 0x4a1   : > { %v5140_v7 = vmax.f32 %v1383_v19, %v1486_v24  ;;  %v1488_v25 = vpop.f32.mrb[13].mxu1  ;;  %v1527_v19 = vld [vmem:[%s5990_s8 + $0xf0] sm:$0xff] }
 0x4a2   : > { %v3744_v22 = vpack.c.bf16 %v1527_v19, %v1525_v18  ;;  %v3059_v25 = vld [vmem:[%s5990_s8 + $0x200] sm:$0xff] }
 0x4a3   : > { %v1564_v34 = vrot.slane %v5140_v7, 1  ;;  %v1756_v35 = vrot.slane %v5140_v7, 2 }
 0x4a4   : > { %v1491_v28 = vpop.f32.mrb[14].mxu1 }
 0x4a5   : > { %v5148_v29 = vmax.f32 %v1388_v21, %v1491_v28  ;;  %v1493_v30 = vpop.f32.mrb[15].mxu1  ;;  %v3062_v21 = vld [vmem:[%s5990_s8 + $0x218] sm:$0xff] }
 0x4a6   : > { %v3746_v24 = vpack.c.bf16 %v3062_v21, %v3060_v20  ;;  %v3066_v28 = vld [vmem:[%s5990_s8 + $0x238] sm:$0xff]  ;;  %v3748_v30 = vpack.c.bf16 %v3061_v26, %v3059_v25 }
 0x4a7   : > { %v1565_v36 = vrot.slane %v5148_v29, 1  ;;  %v1757_v37 = vrot.slane %v5148_v29, 2  ;;  %v3750_v31 = vpack.c.bf16 %v3066_v28, %v3064_v27  ;;  %v2022_v27 = vld [vmem:[%s5994_s12 + $0x8] sm:$0xff]  ;;  %v1944_v28 = vld [vmem:[#allocation10] sm:$0x7f] }
 0x4a9   : > { %v1566_v41 = vsel %vm732_vm4, %v1564_v34, %v1565_v36  ;;  %v5176_v47 = vsel %vm955_vm5, %v1756_v35, %v1757_v37  ;;  %v3068_v34 = vld [vmem:[%s5990_s8 + $0x248] sm:$0xff]  ;;  %v3070_v35 = vld [vmem:[%s5990_s8 + $0x258] sm:$0xff] }
 0x4aa   : > { %1634 = vmatmul.mubr.f32.vlgmr.msra.gmra.mrb[16].mxu0 %v1566_v41  ;;  %v3072_v41 = vld [vmem:[%s5990_s8 + $0x268] sm:$0xff] }
 0x4ab   : > { %3717 = vmatpush1.bf16.msra.mxu0 %v3716_v33  ;;  %1639 = vmatprep.mubr.f32.mxu0 %v4428_v23  ;;  %v3065_v33 = vld [vmem:[%s5990_s8 + $0x230] sm:$0xff] }
 0x4ac   : > { %3719 = vmatprep.subr.bf16.mxu0 %v3718_v38  ;;  %v3754_v38 = vpack.c.bf16 %v3070_v35, %v3068_v34  ;;  %v2025_v34 = vld [vmem:[%s5994_s12 + $0x20] sm:$0xff]  ;;  %v2026_v35 = vld [vmem:[%s5994_s12 + $0x28] sm:$0xff] }
 0x4ae   : > { %1640 = vmatmul.mubr.f32.gmra.mrb[18].mxu0 %v1565_v36  ;;  %v3752_v36 = vpack.c.bf16 %v3065_v33, %v3063_v32  ;;  %v2024_v32 = vld [vmem:[%s5994_s12 + $0x18] sm:$0xff] }
 0x4af   : > { %3721 = vmatpush1.bf16.msra.mxu0 %v3720_v48  ;;  %1710 = vmatprep.mubr.f32.mxu0 %v4428_v23  ;;  %v3071_v48 = vld [vmem:[%s5990_s8 + $0x260] sm:$0xff] }
 0x4b0   : > { %3723 = vmatprep.subr.bf16.mxu0 %v3722_v49  ;;  %v3073_v49 = vld [vmem:[%s5990_s8 + $0x270] sm:$0xff] }
 0x4b1   : > { %v3760_v52 = vpack.c.bf16 %v3073_v49, %v3071_v48  ;;  %v2032_v48 = vld [vmem:[%s5994_s12 + $0x58] sm:$0xff] }
 0x4b3   : > { %3725 = vmatpush1.bf16.msra.mxu0 %v3724_v54  ;;  %v3075_v54 = vld [vmem:[%s5990_s8 + $0x280] sm:$0xff] }
 0x4b4   : > { %3727 = vmatprep.subr.bf16.mxu0 %v3726_v55  ;;  %v3077_v55 = vld [vmem:[%s5990_s8 + $0x290] sm:$0xff] }
 0x4b5   : > { %v3764_v58 = vpack.c.bf16 %v3077_v55, %v3075_v54  ;;  %v2036_v54 = vld [vmem:[%s5994_s12 + $0x78] sm:$0xff] }
 0x4b7   : > { %3729 = vmatpush1.bf16.msra.mxu0 %v3728_v60  ;;  %v3079_v60 = vld [vmem:[%s5990_s8 + $0x2a0] sm:$0xff] }
 0x4b8   : > { %3731 = vmatprep.subr.bf16.mxu0 %v3730_v61  ;;  %v3081_v61 = vld [vmem:[%s5990_s8 + $0x2b0] sm:$0xff] }
 0x4b9   : > { %v3768_v0 = vpack.c.bf16 %v3081_v61, %v3079_v60  ;;  %v2040_v60 = vld [vmem:[%s5994_s12 + $0x98] sm:$0xff] }
 0x4bb   : > { %3733 = vmatpush1.bf16.msra.mxu0 %v3732_v2  ;;  %v3083_v2 = vld [vmem:[%s5990_s8 + $0x2c0] sm:$0xff] }
 0x4bc   : > { %3735 = vmatprep.subr.bf16.mxu0 %v3734_v3  ;;  %v3085_v3 = vld [vmem:[%s5990_s8 + $0x2d0] sm:$0xff] }
 0x4bd   : > { %v3772_v8 = vpack.c.bf16 %v3085_v3, %v3083_v2  ;;  %v2044_v2 = vld [vmem:[%s5994_s12 + $0xb8] sm:$0xff] }
 0x4bf   : > { %3737 = vmatpush1.bf16.msra.mxu0 %v3736_v10  ;;  %v3087_v10 = vld [vmem:[%s5990_s8 + $0x2e0] sm:$0xff] }
 0x4c0   : > { %3739 = vmatprep.subr.bf16.mxu0 %v3738_v11  ;;  %v3089_v11 = vld [vmem:[%s5990_s8 + $0x2f0] sm:$0xff] }
 0x4c1   : > { %v3776_v12 = vpack.c.bf16 %v3089_v11, %v3087_v10  ;;  %v2048_v10 = vld [vmem:[%s5994_s12 + $0xd8] sm:$0xff] }
 0x4c3   : > { %3741 = vmatpush1.bf16.msra.mxu0 %v3740_v16  ;;  %v1851_v16 = vrot.slane %v1842_v13, %v1082_v46  ;;  %v2021_v46 = vld [vmem:[%s5994_s12] sm:$0xff] }
 0x4c4   : > { %3743 = vmatprep.subr.bf16.mxu0 %v3742_v17 }
 0x4c7   : > { %3745 = vmatpush1.bf16.msra.mxu0 %v3744_v22 }
 0x4c8   : > { %3747 = vmatprep.subr.bf16.mxu0 %v3746_v24 }
 0x4ca   : > { %1711 = vmatmul.mubr.f32.vlgmr.msra.gmra.mrb[16].mxu0 %v5140_v7  ;;  %v3074_v7 = vld [vmem:[%s5990_s8 + $0x278] sm:$0xff] }
 0x4cb   : > { %3749 = vmatpush1.bf16.msra.mxu0 %v3748_v30  ;;  %1716 = vmatprep.mubr.f32.mxu0 %v4428_v23  ;;  %v3758_v45 = vpack.c.bf16 %v3074_v7, %v3072_v41  ;;  %v3791_v30 = vpack.c.bf16 %v2022_v27, %v2021_v46  ;;  %v2029_v41 = vld [vmem:[%s5994_s12 + $0x40] sm:$0xff]  ;;  %v2030_v7 = vld [vmem:[%s5994_s12 + $0x48] sm:$0xff] }
 0x4cc   : > { %3751 = vmatprep.subr.bf16.mxu0 %v3750_v31  ;;  %v2023_v31 = vld [vmem:[%s5994_s12 + $0x10] sm:$0xff]  ;;  %v2131_v46 = vld [vmem:[%s6048_s27 + $0x48] sm:$0xff] }
 0x4cd   : > { %v3794_v33 = vpack.c.bf16 %v2024_v32, %v2023_v31  ;;  %v2134_v32 = vld [vmem:[%s6048_s27 + $0x60] sm:$0xff] }
 0x4ce   : > { %1717 = vmatmul.mubr.f32.gmra.mrb[18].mxu0 %v5148_v29 }
 0x4cf   : > { %3753 = vmatpush1.bf16.msra.mxu0 %v3752_v36  ;;  %1825 = vmatprep.mubr.f32.mxu0 %v4428_v23  ;;  %v3797_v36 = vpack.c.bf16 %v2026_v35, %v2025_v34  ;;  %v2136_v35 = vld [vmem:[%s6048_s27 + $0x70] sm:$0xff] }
 0x4d0   : > { %3755 = vmatprep.subr.bf16.mxu0 %v3754_v38  ;;  %v2027_v38 = vld [vmem:[%s5994_s12 + $0x30] sm:$0xff] }
 0x4d1   : > { %v3800_v40 = vpack.c.bf16 %v2028_v39, %v2027_v38  ;;  %v2138_v39 = vld [vmem:[%s6048_s27 + $0x80] sm:$0xff] }
 0x4d3   : > { %3757 = vmatpush1.bf16.msra.mxu0 %v3756_v42  ;;  %v3803_v42 = vpack.c.bf16 %v2030_v7, %v2029_v41  ;;  %v2140_v7 = vld [vmem:[%s6048_s27 + $0x90] sm:$0xff] }
 0x4d4   : > { %3759 = vmatprep.subr.bf16.mxu0 %v3758_v45  ;;  %v2031_v45 = vld [vmem:[%s5994_s12 + $0x50] sm:$0xff] }
 0x4d5   : > { %v3806_v49 = vpack.c.bf16 %v2032_v48, %v2031_v45  ;;  %v2142_v48 = vld [vmem:[%s6048_s27 + $0xa0] sm:$0xff] }
 0x4d7   : > { %3761 = vmatpush1.bf16.msra.mxu0 %v3760_v52  ;;  %v3809_v52 = vpack.c.bf16 %v2034_v51, %v2033_v50  ;;  %v2144_v51 = vld [vmem:[%s6048_s27 + $0xb0] sm:$0xff] }
 0x4d8   : > { %3763 = vmatprep.subr.bf16.mxu0 %v3762_v53  ;;  %v2035_v53 = vld [vmem:[%s5994_s12 + $0x70] sm:$0xff] }
 0x4d9   : > { %v3812_v55 = vpack.c.bf16 %v2036_v54, %v2035_v53  ;;  %v2146_v54 = vld [vmem:[%s6048_s27 + $0xc0] sm:$0xff] }
 0x4db   : > { %3765 = vmatpush1.bf16.msra.mxu0 %v3764_v58  ;;  %v3815_v58 = vpack.c.bf16 %v2038_v57, %v2037_v56  ;;  %v2148_v57 = vld [vmem:[%s6048_s27 + $0xd0] sm:$0xff] }
 0x4dc   : > { %3767 = vmatprep.subr.bf16.mxu0 %v3766_v59  ;;  %v2039_v59 = vld [vmem:[%s5994_s12 + $0x90] sm:$0xff] }
 0x4dd   : > { %v3818_v61 = vpack.c.bf16 %v2040_v60, %v2039_v59  ;;  %v2222_v60 = vld [vmem:[%s6049_s16] sm:$0xff] }
 0x4df   : > { %3769 = vmatpush1.bf16.msra.mxu0 %v3768_v0  ;;  %v3821_v0 = vpack.c.bf16 %v2042_v63, %v2041_v62  ;;  %v3100_v62 = vld [vmem:[%s6049_s16 + $0x70] sm:$0xff] }
 0x4e0   : > { %3771 = vmatprep.subr.bf16.mxu0 %v3770_v1  ;;  %v2043_v1 = vld [vmem:[%s5994_s12 + $0xb0] sm:$0xff] }
 0x4e1   : > { %v3824_v3 = vpack.c.bf16 %v2044_v2, %v2043_v1  ;;  %v2224_v1 = vld [vmem:[%s6049_s16 + $0x10] sm:$0xff]  ;;  %v2225_v2 = vld [vmem:[%s6049_s16 + $0x18] sm:$0xff] }
 0x4e3   : > { %3773 = vmatpush1.bf16.msra.mxu0 %v3772_v8  ;;  %v3827_v8 = vpack.c.bf16 %v2046_v6, %v2045_v4  ;;  %v3102_v4 = vld [vmem:[%s6049_s16 + $0x80] sm:$0xff]  ;;  %v3103_v6 = vld [vmem:[%s6049_s16 + $0x88] sm:$0xff] }
 0x4e4   : > { %3775 = vmatprep.subr.bf16.mxu0 %v3774_v9  ;;  %v2047_v9 = vld [vmem:[%s5994_s12 + $0xd0] sm:$0xff] }
 0x4e5   : > { %v3830_v11 = vpack.c.bf16 %v2048_v10, %v2047_v9  ;;  %v3899_v9 = vpack.c.bf16 %v3103_v6, %v3102_v4  ;;  %v2226_v10 = vld [vmem:[%s6049_s16 + $0x20] sm:$0xff]  ;;  %v3131_v4 = vld [vmem:[%s6049_s16 + $0x158] sm:$0xff] }
 0x4e7   : > { %3777 = vmatpush1.bf16.msra.mxu0 %v3776_v12 }
 0x4e8   : > { %3895 = vmatprep.subr.bf16.mxu0 %v4429_v5 }
 0x4ea   : > { %1826 = vmatmul.mubr.f32.vlgmr.msra.gmra.mrb[16].mxu0 %v5176_v47 }
 0x4eb   : > { %1831 = vmatprep.mubr.f32.mxu0 %v4428_v23 }
 0x4ee   : > { %1832 = vmatmul.mubr.f32.gmra.mrb[18].mxu0 %v1757_v37 }
 0x4ef   : > { %3380 = vmatprep.mubr.msk.f32.mxu0 %vm4430_vm9, %v4428_v23 }
 0x5bd   : > { %v1827_v15 = vpop.f32.mrb[16].mxu0 }
 0x5be   : > { %v1829_v17 = vpop.f32.mrb[17].mxu0  ;;  %v1854_v18 = vadd.f32 %v1847_v14, %v1827_v15  ;;  %v2123_v15 = vld [vmem:[%s6048_s27 + $0x8] sm:$0xff] }
 0x5bf   : > { %v1855_v19 = vadd.f32 %v1851_v16, %v1829_v17 }
 0x5c0   : > { %v1858_v24 = vmax.f32 %v1854_v18, 0.0 }
 0x5c1   : > { %v1833_v20 = vpop.f32.mrb[18].mxu0  ;;  %v1859_v26 = vmax.f32 %v1855_v19, 0.0 }
 0x5c2   : > { %v1856_v21 = vadd.f32 %v1847_v14, %v1833_v20  ;;  %v1835_v22 = vpop.f32.mrb[19].mxu0  ;;  %v2122_v14 = vld [vmem:[%s6047_s24] sm:$0xff] }
 0x5c3   : > { %v1857_v47 = vadd.f32 %v1851_v16, %v1835_v22  ;;  %v3833_v20 = vpack.c.bf16 %v2123_v15, %v2122_v14  ;;  %v2125_v22 = vld [vmem:[%s6048_s27 + $0x18] sm:$0xff] }
 0x5c4   : > { %v1860_v25 = vmax.f32 %v1856_v21, 0.0  ;;  %v2124_v21 = vld [vmem:[%s6048_s27 + $0x10] sm:$0xff] }
 0x5c5   : > { %v1861_v29 = vmax.f32 %v1857_v47, 0.0  ;;  %v3836_v47 = vpack.c.bf16 %v2125_v22, %v2124_v21  ;;  %v2230_v22 = vld [vmem:[%s6049_s16 + $0x40] sm:$0xff] }
 0x5c6   : > { %v3781_v37 = vpack.c.bf16 %v1860_v25, %v1858_v24  ;;  %v2126_v24 = vld [vmem:[%s6048_s27 + $0x20] sm:$0xff]  ;;  %v2127_v25 = vld [vmem:[%s6048_s27 + $0x28] sm:$0xff] }
 0x5c7   : > { %v3778_v44 = vpack.c.bf16 %v1861_v29, %v1859_v26  ;;  %v3839_v26 = vpack.c.bf16 %v2127_v25, %v2126_v24  ;;  %v2128_v29 = vld [vmem:[%s6048_s27 + $0x30] sm:$0xff]  ;;  %v3109_v25 = vld [vmem:[%s6049_s16 + $0xb8] sm:$0xff] }
 0x5c8   : > { %v3108_v24 = vld [vmem:[%s6049_s16 + $0xb0] sm:$0xff] }
 0x5c9   : > { %3780 = vmatprep.subr.msk.bf16.mxu1 %vm3779_vm7, %v3778_v44 }
 0x5ca   : > { %3783 = vmatpush1.bf16.msk.msra.mxu1 %vm3779_vm7, %v3781_v37 }
 0x5cb   : > { %3786 = vmatprep.subr.msk.bf16.mxu1 %vm3779_vm7, %v3778_v44 }
 0x5cd   : > { %3093 = vmatmul.mubr.msk.f32.vlgmr.msra.gmra.mrb[16].mxu1 %vm1863_vm8, %v1862_v43  ;;  %v2130_v43 = vld [vmem:[%s6048_s27 + $0x40] sm:$0xff] }
 0x5ce   : > { %3789 = vmatpush1.bf16.msk.msra.mxu1 %vm3779_vm7, %v3781_v37  ;;  %2012 = vmatprep.mubr.f32.mxu1 %v4428_v23  ;;  %v2129_v37 = vld [vmem:[%s6048_s27 + $0x38] sm:$0xff]  ;;  %v3845_v27 = vpack.c.bf16 %v2131_v46, %v2130_v43  ;;  %v3110_v43 = vld [vmem:[%s6049_s16 + $0xc0] sm:$0xff]  ;;  %v3111_v46 = vld [vmem:[%s6049_s16 + $0xc8] sm:$0xff] }
 0x5cf   : > { %3790 = vmatprep.subr.bf16.mxu1 %v4429_v5  ;;  %v3842_v44 = vpack.c.bf16 %v2129_v37, %v2128_v29  ;;  %v3908_v29 = vpack.c.bf16 %v3109_v25, %v3108_v24  ;;  %v2232_v37 = vld [vmem:[%s6049_s16 + $0x50] sm:$0xff]  ;;  %v3143_v25 = vld [vmem:[%s6049_s16 + $0x1b8] sm:$0xff] }
 0x5d0   : > { %v3142_v24 = vld [vmem:[%s6049_s16 + $0x1b0] sm:$0xff] }
 0x5d1   : > { %3096 = vmatmul.mubr.msk.f32.vlgmr.msra.gmra.mrb[18].mxu1 %vm1863_vm8, %v1944_v28  ;;  %v2132_v28 = vld [vmem:[%s6048_s27 + $0x50] sm:$0xff] }
 0x5d2   : > { %3792 = vmatpush1.bf16.msra.mxu1 %v3791_v30  ;;  %v2133_v30 = vld [vmem:[%s6048_s27 + $0x58] sm:$0xff] }
 0x5d3   : > { %3793 = vmatprep.subr.bf16.mxu1 %v4429_v5  ;;  %v3848_v31 = vpack.c.bf16 %v2133_v30, %v2132_v28  ;;  %v3911_v28 = vpack.c.bf16 %v3111_v46, %v3110_v43  ;;  %v2234_v30 = vld [vmem:[%s6049_s16 + $0x60] sm:$0xff]  ;;  %v3147_v46 = vld [vmem:[%s6049_s16 + $0x1d0] sm:$0xff] }
 0x5d6   : > { %3795 = vmatpush1.bf16.msra.mxu1 %v3794_v33  ;;  %v2135_v33 = vld [vmem:[%s6048_s27 + $0x68] sm:$0xff] }
 0x5d7   : > { %3796 = vmatprep.subr.bf16.mxu1 %v4429_v5  ;;  %v3851_v34 = vpack.c.bf16 %v2135_v33, %v2134_v32  ;;  %v3112_v33 = vld [vmem:[%s6049_s16 + $0xd0] sm:$0xff] }
 0x5da   : > { %3798 = vmatpush1.bf16.msra.mxu1 %v3797_v36  ;;  %v2137_v36 = vld [vmem:[%s6048_s27 + $0x78] sm:$0xff] }
 0x5db   : > { %3799 = vmatprep.subr.bf16.mxu1 %v4429_v5  ;;  %v3854_v38 = vpack.c.bf16 %v2137_v36, %v2136_v35 }
 0x5de   : > { %3801 = vmatpush1.bf16.msra.mxu1 %v3800_v40  ;;  %v2139_v40 = vld [vmem:[%s6048_s27 + $0x88] sm:$0xff] }
 0x5df   : > { %3802 = vmatprep.subr.bf16.mxu1 %v4429_v5  ;;  %v3857_v41 = vpack.c.bf16 %v2139_v40, %v2138_v39  ;;  %v3115_v39 = vld [vmem:[%s6049_s16 + $0xe0] sm:$0xff]  ;;  %v3116_v40 = vld [vmem:[%s6049_s16 + $0xe8] sm:$0xff] }
 0x5e2   : > { %3804 = vmatpush1.bf16.msra.mxu1 %v3803_v42  ;;  %v2141_v42 = vld [vmem:[%s6048_s27 + $0x98] sm:$0xff] }
 0x5e3   : > { %3805 = vmatprep.subr.bf16.mxu1 %v4429_v5  ;;  %v3860_v45 = vpack.c.bf16 %v2141_v42, %v2140_v7 }
 0x5e6   : > { %3807 = vmatpush1.bf16.msra.mxu1 %v3806_v49  ;;  %v2143_v49 = vld [vmem:[%s6048_s27 + $0xa8] sm:$0xff] }
 0x5e7   : > { %3808 = vmatprep.subr.bf16.mxu1 %v4429_v5  ;;  %v3863_v50 = vpack.c.bf16 %v2143_v49, %v2142_v48  ;;  %v3117_v49 = vld [vmem:[%s6049_s16 + $0xf0] sm:$0xff] }
 0x5ea   : > { %3810 = vmatpush1.bf16.msra.mxu1 %v3809_v52  ;;  %v2145_v52 = vld [vmem:[%s6048_s27 + $0xb8] sm:$0xff] }
 0x5eb   : > { %3811 = vmatprep.subr.bf16.mxu1 %v4429_v5  ;;  %v3866_v53 = vpack.c.bf16 %v2145_v52, %v2144_v51  ;;  %v3119_v52 = vld [vmem:[%s6049_s16 + $0x100] sm:$0xff] }
 0x5ee   : > { %3813 = vmatpush1.bf16.msra.mxu1 %v3812_v55  ;;  %v2147_v55 = vld [vmem:[%s6048_s27 + $0xc8] sm:$0xff] }
 0x5ef   : > { %3814 = vmatprep.subr.bf16.mxu1 %v4429_v5  ;;  %v3869_v56 = vpack.c.bf16 %v2147_v55, %v2146_v54  ;;  %v3121_v55 = vld [vmem:[%s6049_s16 + $0x110] sm:$0xff] }
 0x5f2   : > { %3816 = vmatpush1.bf16.msra.mxu1 %v3815_v58  ;;  %v2149_v58 = vld [vmem:[%s6048_s27 + $0xd8] sm:$0xff] }
 0x5f3   : > { %3817 = vmatprep.subr.bf16.mxu1 %v4429_v5  ;;  %v3872_v59 = vpack.c.bf16 %v2149_v58, %v2148_v57  ;;  %v3123_v58 = vld [vmem:[%s6049_s16 + $0x120] sm:$0xff] }
 0x5f6   : > { %3819 = vmatpush1.bf16.msra.mxu1 %v3818_v61  ;;  %v2223_v61 = vld [vmem:[%s6049_s16 + $0x8] sm:$0xff] }
 0x5f7   : > { %3820 = vmatprep.subr.bf16.mxu1 %v4429_v5  ;;  %v3875_v63 = vpack.c.bf16 %v2223_v61, %v2222_v60  ;;  %v3125_v61 = vld [vmem:[%s6049_s16 + $0x130] sm:$0xff] }
 0x5fa   : > { %3822 = vmatpush1.bf16.msra.mxu1 %v3821_v0  ;;  %v3101_v0 = vld [vmem:[%s6049_s16 + $0x78] sm:$0xff] }
 0x5fb   : > { %3823 = vmatprep.subr.bf16.mxu1 %v4429_v5 }
 0x5fe   : > { %3825 = vmatpush1.bf16.msra.mxu1 %v3824_v3  ;;  %v3896_v3 = vpack.c.bf16 %v3101_v0, %v3100_v62  ;;  %v3126_v62 = vld [vmem:[%s6049_s16 + $0x138] sm:$0xff]  ;;  %v3127_v0 = vld [vmem:[%s6049_s16 + $0x140] sm:$0xff] }
 0x5ff   : > { %3826 = vmatprep.subr.bf16.mxu1 %v4429_v5 }
 0x600   : > { %3897 = vmatpush3.bf16.msra.mxu0 %v3896_v3  ;;  %v3130_v3 = vld [vmem:[%s6049_s16 + $0x150] sm:$0xff] }
 0x601   : > { %3898 = vmatprep.subr.bf16.mxu0 %v4429_v5  ;;  %v3938_v6 = vpack.c.bf16 %v3131_v4, %v3130_v3  ;;  %v3171_v3 = vld [vmem:[%s6049_s16 + $0x288] sm:$0xff] }
 0x602   : > { %3828 = vmatpush1.bf16.msra.mxu1 %v3827_v8  ;;  %v3878_v8 = vpack.c.bf16 %v2225_v2, %v2224_v1  ;;  %v3128_v1 = vld [vmem:[%s6049_s16 + $0x148] sm:$0xff] }
 0x603   : > { %3829 = vmatprep.subr.bf16.mxu1 %v4429_v5  ;;  %v3935_v2 = vpack.c.bf16 %v3128_v1, %v3127_v0  ;;  %v3169_v0 = vld [vmem:[%s6049_s16 + $0x278] sm:$0xff] }
 0x604   : > { %3900 = vmatpush3.bf16.msra.mxu0 %v3899_v9  ;;  %v3132_v9 = vld [vmem:[%s6049_s16 + $0x160] sm:$0xff] }
 0x605   : > { %3901 = vmatprep.subr.bf16.mxu0 %v4429_v5 }
 0x606   : > { %3831 = vmatpush1.bf16.msra.mxu1 %v3830_v11  ;;  %v2227_v11 = vld [vmem:[%s6049_s16 + $0x28] sm:$0xff] }
 0x607   : > { %3832 = vmatprep.subr.bf16.mxu1 %v4429_v5  ;;  %v3881_v14 = vpack.c.bf16 %v2227_v11, %v2226_v10  ;;  %v3133_v10 = vld [vmem:[%s6049_s16 + $0x168] sm:$0xff] }
 0x608   : > { %v3941_v11 = vpack.c.bf16 %v3133_v10, %v3132_v9  ;;  %v3175_v10 = vld [vmem:[%s6049_s16 + $0x2a0] sm:$0xff] }
 0x6a0   : > { %v1939_v12 = vpop.f32.mrb[16].mxu1 }
 0x6a1   : > { %v1941_v13 = vpop.f32.mrb[17].mxu1 }
 0x6a4   : > { %v2014_v16 = vpop.f32.mrb[18].mxu1 }
 0x6a5   : > { %v5466_v17 = vmax.f32 %v1939_v12, %v2014_v16  ;;  %v2016_v18 = vpop.f32.mrb[19].mxu1  ;;  %v3104_v12 = vld [vmem:[%s6049_s16 + $0x90] sm:$0xff] }
 0x6a6   : > { %v2020_v19 = vmax.f32 %v1941_v13, %v2016_v18  ;;  %v3105_v13 = vld [vmem:[%s6049_s16 + $0x98] sm:$0xff]  ;;  %v2228_v16 = vld [vmem:[%s6049_s16 + $0x30] sm:$0xff]  ;;  %v3106_v18 = vld [vmem:[%s6049_s16 + $0xa0] sm:$0xff] }
 0x6a7   : > { %v3902_v15 = vpack.c.bf16 %v3105_v13, %v3104_v12  ;;  %v3134_v12 = vld [vmem:[%s6049_s16 + $0x170] sm:$0xff]  ;;  %v3135_v13 = vld [vmem:[%s6049_s16 + $0x178] sm:$0xff] }
 0x6a8   : > { %3097 = vmatprep.mubr.msk.f32.mxu1 %vm1310_vm6, %v2020_v19 }
 0x6a9   : > { %2117 = vmatmul.mubr.f32.vlgmr.msra.gmra.mrb[20].mxu1 %v5466_v17  ;;  %3903 = vmatpush3.bf16.msra.mxu0 %v3902_v15  ;;  %v3136_v15 = vld [vmem:[%s6049_s16 + $0x180] sm:$0xff] }
 0x6aa   : > { %3834 = vmatpush1.bf16.msra.mxu1 %v3833_v20  ;;  %3098 = vmatprep.mubr.msk.f32.mxu1 %vm1310_vm6, %v2020_v19  ;;  %v3107_v19 = vld [vmem:[%s6049_s16 + $0xa8] sm:$0xff] }
 0x6ab   : > { %3835 = vmatprep.subr.bf16.mxu1 %v4429_v5  ;;  %v3905_v21 = vpack.c.bf16 %v3107_v19, %v3106_v18  ;;  %3904 = vmatprep.subr.bf16.mxu0 %v4429_v5  ;;  %v3138_v18 = vld [vmem:[%s6049_s16 + $0x190] sm:$0xff]  ;;  %v3139_v19 = vld [vmem:[%s6049_s16 + $0x198] sm:$0xff] }
 0x6ad   : > { %3906 = vmatpush3.bf16.msra.mxu0 %v3905_v21  ;;  %v3140_v21 = vld [vmem:[%s6049_s16 + $0x1a0] sm:$0xff] }
 0x6ae   : > { %3837 = vmatpush1.bf16.msra.mxu1 %v3836_v47  ;;  %v2231_v47 = vld [vmem:[%s6049_s16 + $0x48] sm:$0xff]  ;;  %3907 = vmatprep.subr.bf16.mxu0 %v4429_v5 }
 0x6af   : > { %3838 = vmatprep.subr.bf16.mxu1 %v4429_v5 }
 0x6b1   : > { %3909 = vmatpush3.bf16.msra.mxu0 %v3908_v29  ;;  %v3145_v29 = vld [vmem:[%s6049_s16 + $0x1c0] sm:$0xff] }
 0x6b2   : > { %3840 = vmatpush1.bf16.msra.mxu1 %v3839_v26  ;;  %v3887_v26 = vpack.c.bf16 %v2231_v47, %v2230_v22  ;;  %3910 = vmatprep.subr.bf16.mxu0 %v4429_v5  ;;  %v3141_v22 = vld [vmem:[%s6049_s16 + $0x1a8] sm:$0xff] }
 0x6b3   : > { %3841 = vmatprep.subr.bf16.mxu1 %v4429_v5  ;;  %v3953_v47 = vpack.c.bf16 %v3141_v22, %v3140_v21  ;;  %v3183_v22 = vld [vmem:[%s6049_s16 + $0x2e0] sm:$0xff] }
 0x6b5   : > { %3912 = vmatpush3.bf16.msra.mxu0 %v3911_v28 }
 0x6b6   : > { %3843 = vmatpush1.bf16.msra.mxu1 %v3842_v44  ;;  %v2233_v44 = vld [vmem:[%s6049_s16 + $0x58] sm:$0xff]  ;;  %3913 = vmatprep.subr.bf16.mxu0 %v4429_v5 }
 0x6b7   : > { %3844 = vmatprep.subr.bf16.mxu1 %v4429_v5 }
 0x6ba   : > { %3846 = vmatpush1.bf16.msra.mxu1 %v3845_v27  ;;  %v3890_v27 = vpack.c.bf16 %v2233_v44, %v2232_v37  ;;  %v3146_v37 = vld [vmem:[%s6049_s16 + $0x1c8] sm:$0xff] }
 0x6bb   : > { %3847 = vmatprep.subr.bf16.mxu1 %v4429_v5  ;;  %v3959_v44 = vpack.c.bf16 %v3146_v37, %v3145_v29  ;;  %v3187_v37 = vld [vmem:[%s6049_s16 + $0x300] sm:$0xff] }
 0x6be   : > { %3849 = vmatpush1.bf16.msra.mxu1 %v3848_v31  ;;  %v2235_v31 = vld [vmem:[%s6049_s16 + $0x68] sm:$0xff] }
 0x6bf   : > { %3850 = vmatprep.subr.bf16.mxu1 %v4429_v5  ;;  %v3893_v32 = vpack.c.bf16 %v2235_v31, %v2234_v30  ;;  %v3149_v30 = vld [vmem:[%s6049_s16 + $0x1e0] sm:$0xff]  ;;  %v3150_v31 = vld [vmem:[%s6049_s16 + $0x1e8] sm:$0xff] }
 0x6c2   : > { %3852 = vmatpush1.bf16.msra.mxu1 %v3851_v34  ;;  %v3113_v34 = vld [vmem:[%s6049_s16 + $0xd8] sm:$0xff] }
 0x6c3   : > { %3853 = vmatprep.subr.bf16.mxu1 %v4429_v5  ;;  %v3914_v35 = vpack.c.bf16 %v3113_v34, %v3112_v33  ;;  %v3151_v33 = vld [vmem:[%s6049_s16 + $0x1f0] sm:$0xff]  ;;  %v3152_v34 = vld [vmem:[%s6049_s16 + $0x1f8] sm:$0xff] }
 0x6c5   : > { %3915 = vmatpush3.bf16.msra.mxu0 %v3914_v35  ;;  %v3968_v35 = vpack.c.bf16 %v3152_v34, %v3151_v33 }
 0x6c6   : > { %3855 = vmatpush1.bf16.msra.mxu1 %v3854_v38  ;;  %3916 = vmatprep.subr.bf16.mxu0 %v4429_v5 }
 0x6c7   : > { %3856 = vmatprep.subr.bf16.mxu1 %v4429_v5 }
 0x6ca   : > { %3858 = vmatpush1.bf16.msra.mxu1 %v3857_v41 }
 0x6cb   : > { %3859 = vmatprep.subr.bf16.mxu1 %v4429_v5 }
 0x6ce   : > { %3861 = vmatpush1.bf16.msra.mxu1 %v3860_v45  ;;  %v3917_v45 = vpack.c.bf16 %v3116_v40, %v3115_v39  ;;  %v3155_v40 = vld [vmem:[%s6049_s16 + $0x210] sm:$0xff] }
 0x6cf   : > { %3862 = vmatprep.subr.bf16.mxu1 %v4429_v5 }
 0x6d2   : > { %3864 = vmatpush1.bf16.msra.mxu1 %v3863_v50  ;;  %v3118_v50 = vld [vmem:[%s6049_s16 + $0xf8] sm:$0xff] }
 0x6d3   : > { %3865 = vmatprep.subr.bf16.mxu1 %v4429_v5  ;;  %v3920_v51 = vpack.c.bf16 %v3118_v50, %v3117_v49  ;;  %v3160_v50 = vld [vmem:[%s6049_s16 + $0x230] sm:$0xff] }
 0x6d6   : > { %3867 = vmatpush1.bf16.msra.mxu1 %v3866_v53  ;;  %v3120_v53 = vld [vmem:[%s6049_s16 + $0x108] sm:$0xff] }
 0x6d7   : > { %3868 = vmatprep.subr.bf16.mxu1 %v4429_v5  ;;  %v3923_v54 = vpack.c.bf16 %v3120_v53, %v3119_v52 }
 0x6da   : > { %3870 = vmatpush1.bf16.msra.mxu1 %v3869_v56  ;;  %v3122_v56 = vld [vmem:[%s6049_s16 + $0x118] sm:$0xff] }
 0x6db   : > { %3871 = vmatprep.subr.bf16.mxu1 %v4429_v5  ;;  %v3926_v57 = vpack.c.bf16 %v3122_v56, %v3121_v55  ;;  %v3163_v55 = vld [vmem:[%s6049_s16 + $0x248] sm:$0xff] }
 0x6de   : > { %3873 = vmatpush1.bf16.msra.mxu1 %v3872_v59  ;;  %v3124_v59 = vld [vmem:[%s6049_s16 + $0x128] sm:$0xff] }
 0x6df   : > { %3874 = vmatprep.subr.bf16.mxu1 %v4429_v5  ;;  %v3929_v60 = vpack.c.bf16 %v3124_v59, %v3123_v58  ;;  %v3165_v58 = vld [vmem:[%s6049_s16 + $0x258] sm:$0xff] }
 0x6e1   : > { %2215 = vmatmul.mubr.f32.vlgmr.msra.gmra.mrb[22].mxu1 %v5466_v17  ;;  %v2229_v17 = vld [vmem:[%s6049_s16 + $0x38] sm:$0xff] }
 0x6e2   : > { %3876 = vmatpush3.bf16.msra.mxu1 %v3875_v63  ;;  %v3884_v20 = vpack.c.bf16 %v2229_v17, %v2228_v16  ;;  %3349 = vmatprep.mubr.msk.f32.mxu1 %vm4430_vm9, %v4428_v23  ;;  %v3932_v63 = vpack.c.bf16 %v3126_v62, %v3125_v61  ;;  %v3137_v16 = vld [vmem:[%s6049_s16 + $0x188] sm:$0xff] }
 0x6e3   : > { %3877 = vmatprep.subr.bf16.mxu1 %v4429_v5  ;;  %v3947_v17 = vpack.c.bf16 %v3137_v16, %v3136_v15  ;;  %v3167_v61 = vld [vmem:[%s6049_s16 + $0x268] sm:$0xff]  ;;  %v3178_v15 = vld [vmem:[%s6049_s16 + $0x2b8] sm:$0xff] }
 0x6e6   : > { %3879 = vmatpush3.bf16.msra.mxu1 %v3878_v8 }
 0x6e7   : > { %3880 = vmatprep.subr.bf16.mxu1 %v4429_v5 }
 0x6ea   : > { %3882 = vmatpush3.bf16.msra.mxu1 %v3881_v14  ;;  %v3944_v14 = vpack.c.bf16 %v3135_v13, %v3134_v12 }
 0x6eb   : > { %3883 = vmatprep.subr.bf16.mxu1 %v4429_v5 }
 0x6ee   : > { %3885 = vmatpush3.bf16.msra.mxu1 %v3884_v20  ;;  %v3950_v20 = vpack.c.bf16 %v3139_v19, %v3138_v18  ;;  %v3180_v18 = vld [vmem:[%s6049_s16 + $0x2c8] sm:$0xff] }
 0x6ef   : > { %3886 = vmatprep.subr.bf16.mxu1 %v4429_v5 }
 0x6f2   : > { %3888 = vmatpush3.bf16.msra.mxu1 %v3887_v26  ;;  %v3956_v26 = vpack.c.bf16 %v3143_v25, %v3142_v24  ;;  %v3185_v25 = vld [vmem:[%s6049_s16 + $0x2f0] sm:$0xff] }
 0x6f3   : > { %3889 = vmatprep.subr.bf16.mxu1 %v4429_v5 }
 0x6f6   : > { %3891 = vmatpush3.bf16.msra.mxu1 %v3890_v27  ;;  %v3148_v27 = vld [vmem:[%s6049_s16 + $0x1d8] sm:$0xff] }
 0x6f7   : > { %3892 = vmatprep.subr.bf16.mxu1 %v4429_v5  ;;  %v3962_v28 = vpack.c.bf16 %v3148_v27, %v3147_v46 }
 0x6fa   : > { %3894 = vmatpush3.bf16.msra.mxu1 %v3893_v32  ;;  %v3965_v32 = vpack.c.bf16 %v3150_v31, %v3149_v30  ;;  %v2221_v30 = vld [vmem:[#allocation11] sm:$0x1] }
 0x77c   : > { %v2118_v36 = vpop.f32.mrb[20].mxu1 }
 0x77d   : > { %v2120_v38 = vpop.f32.mrb[21].mxu1 }
 0x77e   : > { %v3154_v38 = vld [vmem:[%s6049_s16 + $0x208] sm:$0xff] }
 0x7b4   : > { %v2216_v41 = vpop.f32.mrb[22].mxu1 }
 0x7b5   : > { %v5671_v7 = vmax.f32 %v2118_v36, %v2216_v41  ;;  %v2218_v42 = vpop.f32.mrb[23].mxu1  ;;  %v3153_v36 = vld [vmem:[%s6049_s16 + $0x200] sm:$0xff]  ;;  %v3156_v41 = vld [vmem:[%s6049_s16 + $0x218] sm:$0xff] }
 0x7b6   : > { %v3971_v39 = vpack.c.bf16 %v3154_v38, %v3153_v36  ;;  %v3974_v42 = vpack.c.bf16 %v3156_v41, %v3155_v40 }
 0x7b7   : > { %3350 = vmatmul.mubr.msk.f32.vlgmr.msra.gmra.mrb[24].mxu1 %vm2236_vm10, %v5671_v7  ;;  %v2326_v48 = vrot.slane %v5671_v7, 1  ;;  %v2415_v8 = vrot.slane %v5671_v7, 2  ;;  %v2504_v43 = vrot.slane %v5671_v7, 3  ;;  %v2593_v53 = vrot.slane %v5671_v7, 4 }
 0x7b8   : > { %v2682_v13 = vrot.slane %v5671_v7, 5  ;;  %v2771_v46 = vrot.slane %v5671_v7, 6 }
 0x7b9   : > { %3381 = vmatmul.mubr.msk.f32.vlgmr.msra.gmra.mrb[20].mxu0 %vm2236_vm10, %v2326_v48  ;;  %v3158_v48 = vld [vmem:[%s6049_s16 + $0x228] sm:$0xff] }
 0x7ba   : > { %3918 = vmatpush3.bf16.msra.mxu0 %v3917_v45  ;;  %3411 = vmatprep.mubr.msk.f32.mxu0 %vm4430_vm9, %v4428_v23  ;;  %v3157_v45 = vld [vmem:[%s6049_s16 + $0x220] sm:$0xff] }
 0x7bb   : > { %3919 = vmatprep.subr.bf16.mxu0 %v4429_v5  ;;  %v3977_v49 = vpack.c.bf16 %v3158_v48, %v3157_v45 }
 0x7be   : > { %3921 = vmatpush3.bf16.msra.mxu0 %v3920_v51  ;;  %v3161_v51 = vld [vmem:[%s6049_s16 + $0x238] sm:$0xff] }
 0x7bf   : > { %3922 = vmatprep.subr.bf16.mxu0 %v4429_v5  ;;  %v3980_v52 = vpack.c.bf16 %v3161_v51, %v3160_v50 }
 0x7c2   : > { %3924 = vmatpush3.bf16.msra.mxu0 %v3923_v54  ;;  %v3162_v54 = vld [vmem:[%s6049_s16 + $0x240] sm:$0xff] }
 0x7c3   : > { %3925 = vmatprep.subr.bf16.mxu0 %v4429_v5  ;;  %v3983_v56 = vpack.c.bf16 %v3163_v55, %v3162_v54 }
 0x7c6   : > { %3927 = vmatpush3.bf16.msra.mxu0 %v3926_v57  ;;  %v3164_v57 = vld [vmem:[%s6049_s16 + $0x250] sm:$0xff] }
 0x7c7   : > { %3928 = vmatprep.subr.bf16.mxu0 %v4429_v5  ;;  %v3986_v59 = vpack.c.bf16 %v3165_v58, %v3164_v57 }
 0x7ca   : > { %3930 = vmatpush3.bf16.msra.mxu0 %v3929_v60  ;;  %v3166_v60 = vld [vmem:[%s6049_s16 + $0x260] sm:$0xff] }
 0x7cb   : > { %3931 = vmatprep.subr.bf16.mxu0 %v4429_v5  ;;  %v3989_v62 = vpack.c.bf16 %v3167_v61, %v3166_v60 }
 0x7ce   : > { %3933 = vmatpush3.bf16.msra.mxu0 %v3932_v63  ;;  %v3168_v63 = vld [vmem:[%s6049_s16 + $0x270] sm:$0xff] }
 0x7cf   : > { %3934 = vmatprep.subr.bf16.mxu0 %v4429_v5  ;;  %v3992_v1 = vpack.c.bf16 %v3169_v0, %v3168_v63 }
 0x7d2   : > { %3936 = vmatpush3.bf16.msra.mxu0 %v3935_v2  ;;  %v3170_v2 = vld [vmem:[%s6049_s16 + $0x280] sm:$0xff] }
 0x7d3   : > { %3937 = vmatprep.subr.bf16.mxu0 %v4429_v5  ;;  %v3995_v4 = vpack.c.bf16 %v3171_v3, %v3170_v2 }
 0x7d5   : > { %3412 = vmatmul.mubr.msk.f32.vlgmr.msra.gmra.mrb[20].mxu0 %vm2236_vm10, %v2415_v8  ;;  %v3173_v8 = vld [vmem:[%s6049_s16 + $0x298] sm:$0xff] }
 0x7d6   : > { %3939 = vmatpush3.bf16.msra.mxu0 %v3938_v6  ;;  %3442 = vmatprep.mubr.msk.f32.mxu0 %vm4430_vm9, %v4428_v23  ;;  %v3172_v6 = vld [vmem:[%s6049_s16 + $0x290] sm:$0xff] }
 0x7d7   : > { %3940 = vmatprep.subr.bf16.mxu0 %v4429_v5  ;;  %v3998_v9 = vpack.c.bf16 %v3173_v8, %v3172_v6 }
 0x7da   : > { %3942 = vmatpush3.bf16.msra.mxu0 %v3941_v11  ;;  %v3176_v11 = vld [vmem:[%s6049_s16 + $0x2a8] sm:$0xff] }
 0x7db   : > { %3943 = vmatprep.subr.bf16.mxu0 %v4429_v5  ;;  %v4001_v12 = vpack.c.bf16 %v3176_v11, %v3175_v10 }
 0x7de   : > { %3945 = vmatpush3.bf16.msra.mxu0 %v3944_v14  ;;  %v3177_v14 = vld [vmem:[%s6049_s16 + $0x2b0] sm:$0xff] }
 0x7df   : > { %3946 = vmatprep.subr.bf16.mxu0 %v4429_v5  ;;  %v4004_v16 = vpack.c.bf16 %v3178_v15, %v3177_v14 }
 0x7e2   : > { %3948 = vmatpush3.bf16.msra.mxu0 %v3947_v17  ;;  %v3179_v17 = vld [vmem:[%s6049_s16 + $0x2c0] sm:$0xff] }
 0x7e3   : > { %3949 = vmatprep.subr.bf16.mxu0 %v4429_v5  ;;  %v4007_v19 = vpack.c.bf16 %v3180_v18, %v3179_v17 }
 0x7e6   : > { %3951 = vmatpush3.bf16.msra.mxu0 %v3950_v20  ;;  %v3181_v20 = vld [vmem:[%s6049_s16 + $0x2d0] sm:$0xff] }
 0x7e7   : > { %3952 = vmatprep.subr.bf16.mxu0 %v4429_v5 }
 0x7ea   : > { %3954 = vmatpush3.bf16.msra.mxu0 %v3953_v47  ;;  %v3184_v47 = vld [vmem:[%s6049_s16 + $0x2e8] sm:$0xff] }
 0x7eb   : > { %3955 = vmatprep.subr.bf16.mxu0 %v4429_v5  ;;  %v4013_v24 = vpack.c.bf16 %v3184_v47, %v3183_v22 }
 0x7ee   : > { %3957 = vmatpush3.bf16.msra.mxu0 %v3956_v26  ;;  %v3186_v26 = vld [vmem:[%s6049_s16 + $0x2f8] sm:$0xff] }
 0x7ef   : > { %3958 = vmatprep.subr.bf16.mxu0 %v4429_v5  ;;  %v4016_v29 = vpack.c.bf16 %v3186_v26, %v3185_v25 }
 0x7f1   : > { %3443 = vmatmul.mubr.msk.f32.vlgmr.msra.gmra.mrb[20].mxu0 %vm2236_vm10, %v2504_v43 }
 0x7f2   : > { %3960 = vmatpush3.bf16.msra.mxu0 %v3959_v44  ;;  %3473 = vmatprep.mubr.msk.f32.mxu0 %vm4430_vm9, %v4428_v23  ;;  %v3188_v44 = vld [vmem:[%s6049_s16 + $0x308] sm:$0xff] }
 0x7f3   : > { %3961 = vmatprep.subr.bf16.mxu0 %v4429_v5  ;;  %v4019_v43 = vpack.c.bf16 %v3188_v44, %v3187_v37 }
 0x7f6   : > { %3963 = vmatpush3.bf16.msra.mxu0 %v3962_v28 }
 0x7f7   : > { %3964 = vmatprep.subr.bf16.mxu0 %v4429_v5 }
 0x7fa   : > { %3966 = vmatpush3.bf16.msra.mxu0 %v3965_v32 }
 0x7fb   : > { %3967 = vmatprep.subr.bf16.mxu0 %v4429_v5 }
 0x7fe   : > { %3969 = vmatpush3.bf16.msra.mxu0 %v3968_v35 }
 0x7ff   : > { %3970 = vmatprep.subr.bf16.mxu0 %v4429_v5 }
 0x802   : > { %3972 = vmatpush3.bf16.msra.mxu0 %v3971_v39 }
 0x803   : > { %3973 = vmatprep.subr.bf16.mxu0 %v4429_v5 }
 0x806   : > { %3975 = vmatpush3.bf16.msra.mxu0 %v3974_v42 }
 0x807   : > { %3976 = vmatprep.subr.bf16.mxu0 %v4429_v5 }
 0x80a   : > { %3978 = vmatpush3.bf16.msra.mxu0 %v3977_v49 }
 0x80b   : > { %3979 = vmatprep.subr.bf16.mxu0 %v4429_v5 }
 0x80d   : > { %3474 = vmatmul.mubr.msk.f32.vlgmr.msra.gmra.mrb[20].mxu0 %vm2236_vm10, %v2593_v53 }
 0x80e   : > { %3981 = vmatpush3.bf16.msra.mxu0 %v3980_v52  ;;  %3504 = vmatprep.mubr.msk.f32.mxu0 %vm4430_vm9, %v4428_v23 }
 0x80f   : > { %3982 = vmatprep.subr.bf16.mxu0 %v4429_v5 }
 0x812   : > { %3984 = vmatpush3.bf16.msra.mxu0 %v3983_v56 }
 0x813   : > { %3985 = vmatprep.subr.bf16.mxu0 %v4429_v5 }
 0x816   : > { %3987 = vmatpush3.bf16.msra.mxu0 %v3986_v59 }
 0x817   : > { %3988 = vmatprep.subr.bf16.mxu0 %v4429_v5 }
 0x81a   : > { %3990 = vmatpush3.bf16.msra.mxu0 %v3989_v62 }
 0x81b   : > { %3991 = vmatprep.subr.bf16.mxu0 %v4429_v5 }
 0x81e   : > { %3993 = vmatpush3.bf16.msra.mxu0 %v3992_v1 }
 0x81f   : > { %3994 = vmatprep.subr.bf16.mxu0 %v4429_v5 }
 0x822   : > { %3996 = vmatpush3.bf16.msra.mxu0 %v3995_v4 }
 0x823   : > { %3997 = vmatprep.subr.bf16.mxu0 %v4429_v5 }
 0x826   : > { %3999 = vmatpush3.bf16.msra.mxu0 %v3998_v9 }
 0x827   : > { %4000 = vmatprep.subr.bf16.mxu0 %v4429_v5 }
 0x829   : > { %3505 = vmatmul.mubr.msk.f32.vlgmr.msra.gmra.mrb[20].mxu0 %vm2236_vm10, %v2682_v13 }
 0x82a   : > { %4002 = vmatpush3.bf16.msra.mxu0 %v4001_v12  ;;  %3535 = vmatprep.mubr.msk.f32.mxu0 %vm4430_vm9, %v4428_v23  ;;  %v3182_v23 = vld [vmem:[%s6049_s16 + $0x2d8] sm:$0xff] }
 0x82b   : > { %4003 = vmatprep.subr.bf16.mxu0 %v4429_v5  ;;  %v4010_v21 = vpack.c.bf16 %v3182_v23, %v3181_v20 }
 0x82e   : > { %4005 = vmatpush3.bf16.msra.mxu0 %v4004_v16 }
 0x82f   : > { %4006 = vmatprep.subr.bf16.mxu0 %v4429_v5 }
 0x832   : > { %4008 = vmatpush3.bf16.msra.mxu0 %v4007_v19 }
 0x833   : > { %4009 = vmatprep.subr.bf16.mxu0 %v4429_v5 }
 0x836   : > { %4011 = vmatpush3.bf16.msra.mxu0 %v4010_v21 }
 0x837   : > { %4012 = vmatprep.subr.bf16.mxu0 %v4429_v5 }
 0x83a   : > { %4014 = vmatpush3.bf16.msra.mxu0 %v4013_v24 }
 0x83b   : > { %4015 = vmatprep.subr.bf16.mxu0 %v4429_v5 }
 0x83e   : > { %4017 = vmatpush3.bf16.msra.mxu0 %v4016_v29 }
 0x83f   : > { %4018 = vmatprep.subr.bf16.mxu0 %v4429_v5 }
 0x842   : > { %4020 = vmatpush3.bf16.msra.mxu0 %v4019_v43 }
 0x845   : > { %3536 = vmatmul.mubr.msk.f32.vlgmr.msra.gmra.mrb[20].mxu0 %vm2236_vm10, %v2771_v46 }
 0x88a   : > { %v2306_v27 = vpop.f32.mrb[24].mxu1 }
 0x88b   : > { %v3351_v28 = vpop.f32.mrb[25].mxu1  ;;  %v2310_v31 = vadd.f32 %v2306_v27, %v2221_v30 }
 0x918   : > { %v2840_v32 = vpop.f32.mrb[20].mxu0 }
 0x919   : > { %v4030_v33 = vadd.f32 %v2840_v32, %v2310_v31  ;;  %v3537_v34 = vpop.f32.mrb[21].mxu0 }
 0x91b   : > { %2845 = vst [vmem:[%s595_s9] sm:$0x1] %v4030_v33 }
 0x91c   : > { %4350 = shalt.err (!%p4347_p2)
}
 0x91d   : > { %s4351_s21 = scalar_lea.hbm %s5940_s19, 16  ;;  %s4355_s23 = scalar_lea.hbm %s6052_s17, 32 }
 0x91e   : > { %p4352_p3 = scmp.ne.s32.totalorder %s5940_s19, %s4351_s21  ;;  %p4356_p7 = scmp.lt.u32.totalorder %s5940_s19, %s6052_s17 }
 0x91f   : > { %p4357_p8 = scmp.lt.u32.totalorder %s4355_s23, %s4351_s21  ;;  %p4359_p13 = scmp.lt.u32.totalorder %s4351_s21, %s5940_s19 }
 0x920   : > { %p4353_p4 = pnand %p4352_p3, %p6053_p1 }
 0x921   : > { %p4358_p11 = por %p4357_p8, %p4356_p7 }
 0x922   : > { %p4354_p12 = pneg %p4353_p4 }
 0x923   : > { %p4360_p6 = por %p4359_p13, %p4358_p11 }
 0x925   : > { %p4361_p9 = pnand %p4360_p6, %p4354_p12 }
 0x927   : > { %4364 = shalt.err (!%p4361_p9)
}
 0x928   : > { %4085 = dma.vmem_to_hbm [thread:$0]  (%p6053_p1), %s5942_s14, 16, %s5940_s19, %s2847_s18  }
 0x929 PF: > { %s6054_s9 = sld [smem:[#allocation22_spill]]  ;;  %s6055_s0 = sld [smem:[#allocation19_spill]] }
 0x92a   : > { %s6056_s24 = sld [smem:[#allocation26_spill]] }
 0x92f   : > { %p4122_p5 = scmp.ge.s32.totalorder %s6054_s9, 2  ;;  %s2871_s26 = sand.u32 1, %s6055_s0  }
 0x930   : > { %p6057_p10 = scmp.ne.s32.totalorder %s6056_s24, 0  ;;  %s2872_s25 = scalar_lea.sflag [#allocation4], %s2871_s26 }
 0x932   : > { %p4107_p0 = pnand %p4122_p5, %p6057_p10 }
 0x934   : > { %4398 = dma.done.wait (!%p4107_p0), %s2872_s25, 16  }
 0x935   : > { %4400 = vsyncadd (!%p4107_p0), %s2872_s25, 4294967280  ;;  %s6058_s24 = sld [smem:[#allocation23_spill]]  ;;  %s6059_s21 = sld [smem:[#allocation20_spill]] }
 0x936   : > { %s6060_s22 = sld [smem:[#allocation21_spill]]  ;;  %s6061_s23 = sld [smem:[#allocation24_spill]] }
 0x93b   : > { %p30_p2 = scmp.ge.s32.totalorder %s6058_s24, 4  }
 0x93d   :  { %32 = sbr.rel (!%p30_p2) target bundleno = 14 (0xe), region = 154 }
 0x944   :  { %2876 = vsyncpa [#allocation3], 1 }
 0x945   :  { %2878 = vsyncpa [#allocation3 + $0x1], 1 }
 0x946   :  { %2879 = vsyncpa [#allocation6], 1 }
 0x947   :  { %2880 = vsyncpa [#allocation9], 1 }
 0x948   :  { %2881 = vsyncpa [#allocation12], 1 }
 0x949   :  { %2882 = vsyncpa [#allocation4], 1 }
 0x94a   :  { %2884 = vsyncpa [#allocation4 + $0x1], 1 }

</bundles_post_ra>
